<compile_context>
chip_gen: v7x
topology: tpu7x:2x2x1
jax: 0.10.0
libtpu: 0.0.40
codegen_flags: <defaults>
</compile_context>

<pallas_src>
import jax
import jax.numpy as jnp
from jax import lax
from jax.experimental import pallas as pl
from jax.experimental.pallas import tpu as pltpu

_VMEM = pl.BlockSpec(memory_space=pltpu.MemorySpace.VMEM)
_SMEM = pl.BlockSpec(memory_space=pltpu.MemorySpace.SMEM)


def _round_up(x, m):
    return ((x + m - 1) // m) * m


# -----------------------------------------------------------------------------
# Fused kernel: bi-GRU -> masked attention -> (Linear + folded BN) -> ReLU ->
# Linear -> sigmoid.  All operands are small and fully VMEM resident.
#
# Layouts (GP = per-gate lane pitch, multiple of 128, 2E <= GP; Bp = batch padded to 8):
#   x_ref   : (L*Bp, 2E)   row t*Bp+b = [x_t[b] | x_{L-1-t}[b]]  (fwd | time-reversed)
#   gru_ref : (200, 3*GP)  rows [0:2E]=wih, [64:64+GP]=whh (block-diag), [192]=bih, [193]=bhh;
#                          gate blocks [r|z|n]; inside a block lanes [0:E]=fwd, [E:2E]=bwd.
#   col_ref : (GP+H, GP)   rows [0:GP]=w_att column, [GP:GP+H]=w2 column, lane-replicated.
#   cls_ref : (·, H)       rows [0:GP]=w1 (attention part, BN folded), [GP:GP+EMOP]=w1 (emotion
#                          part), [GP+EMOP]=folded bias.
#   scal_ref: (2,) SMEM    [attention bias, output bias]
#   h       : (Bp, GP)     lanes [0:E]=h_f(t), [E:2E]=h_b(orig time L-1-t), rest 0.
# -----------------------------------------------------------------------------
def _dual_emotion_kernel(x_ref, mask_ref, emo_ref, gru_ref, col_ref, cls_ref,
                         scal_ref, out_ref, featf_scr, featb_scr):
    L, Bp, GP = featf_scr.shape
    E2 = x_ref.shape[1]                 # 2 * emb_dim
    E = E2 // 2
    H = cls_ref.shape[1]
    EMOP = emo_ref.shape[1]
    r_whh = _round_up(E2, 8)            # row offset of whh inside the GRU slab

    # ---- unpack the GRU slab once (outside the recurrence) ----
    wih = gru_ref[0:E2, :]                                   # (2E, 3*GP)
    whh = gru_ref[r_whh:r_whh + GP, :]                       # (GP, 3*GP)
    bih = gru_ref[r_whh + GP:r_whh + GP + 1, :]              # (1, 3*GP)
    bhh = gru_ref[r_whh + GP + 1:r_whh + GP + 2, :]          # (1, 3*GP)

    # ---- bi-GRU: input projection hoisted (one matmul, all steps, both directions) ----
    gi_all = (jnp.dot(x_ref[...], wih, preferred_element_type=jnp.float32)
              + bih)                                         # (L*Bp, 3*GP)

    # TODO(synk): candidate for explicit MXU weight residency (matmul_push_rhs once, acc per
    # step) -- pending bundle-dump verification that Mosaic does not already hoist the push.
    h = jnp.zeros((Bp, GP), jnp.float32)
    for t in range(L):                  # fully unrolled (L static & small), static slices
        gi = gi_all[t * Bp:(t + 1) * Bp, :]                  # tile-aligned (Bp = 8)
        gh = jnp.dot(h, whh, preferred_element_type=jnp.float32) + bhh
        r = jax.nn.sigmoid(gi[:, 0:GP] + gh[:, 0:GP])
        z = jax.nn.sigmoid(gi[:, GP:2 * GP] + gh[:, GP:2 * GP])
        n = jnp.tanh(gi[:, 2 * GP:3 * GP] + r * gh[:, 2 * GP:3 * GP])
        h = (1.0 - z) * n + z * h
        featf_scr[t] = h                # full-vreg store; fwd lanes valid for time t
        featb_scr[L - 1 - t] = h        # full-vreg store; bwd lanes valid for time L-1-t

    # ---- both directions in original time order via one lane-mask select ----
    fwd_lane = lax.broadcasted_iota(jnp.int32, (1, 1, GP), 2) < E
    feat = jnp.where(fwd_lane, featf_scr[...], featb_scr[...])      # (L, Bp, GP)
    feat2d = feat.reshape(L * Bp, GP)

    # ---- masked attention: scores via one MXU matmul (w_att lane-replicated) ----
    watt_blk = col_ref[0:GP, :]                               # (GP, GP), identical lanes
    sraw = (jnp.dot(feat2d, watt_blk, preferred_element_type=jnp.float32)
            + scal_ref[0])                                    # (L*Bp, GP), identical lanes
    sraw = jnp.where(mask_ref[...] == 0.0, jnp.float32(-1e30), sraw)
    sc = sraw.reshape(L, Bp, GP)
    # softmax over time (leading, un-tiled axis => pure elementwise reductions across vregs).
    # A fully-masked row degenerates to uniform weights over padding (finite; sliced off).
    m = jnp.max(sc, axis=0, keepdims=True)
    e = jnp.exp(sc - m)
    p = e * pl.reciprocal(jnp.sum(e, axis=0, keepdims=True), approx=True)
    attn = jnp.sum(p * feat, axis=0)                          # (Bp, GP) = [att_f | att_b | 0]

    # ---- classifier: Linear (BN folded) -> ReLU -> Linear -> sigmoid (dropout = identity) ----
    w1a = cls_ref[0:GP, :]
    w1e = cls_ref[GP:GP + EMOP, :]
    b1 = cls_ref[GP + EMOP:GP + EMOP + 1, :]
    h1 = (jnp.dot(attn, w1a, preferred_element_type=jnp.float32)
          + jnp.dot(emo_ref[...], w1e, preferred_element_type=jnp.float32) + b1)
    h1 = jnp.maximum(h1, 0.0)
    w2_blk = col_ref[GP:GP + H, :]                            # (H, GP), lane-replicated
    o = jnp.dot(h1, w2_blk, preferred_element_type=jnp.float32) + scal_ref[1]
    out_ref[...] = jax.nn.sigmoid(o)                          # lane-dense store; lane 0 is used


# -----------------------------------------------------------------------------
# Parameter init (synthetic, PyTorch layouts).
# -----------------------------------------------------------------------------
def init_params(key, emb_dim, vocab, mlp_hidden, emo_dim):
    E, s = emb_dim, 0.1
    ks = jax.random.split(key, 8)
    p = {'emb_table': jax.random.normal(ks[0], (vocab, E), jnp.float32) * s}
    for d, (wi, bi, wh, bh) in enumerate(
            [('w_ih_f', 'b_ih_f', 'w_hh_f', 'b_hh_f'),
             ('w_ih_b', 'b_ih_b', 'w_hh_b', 'b_hh_b')]):
        k1, k2, k3, k4 = jax.random.split(ks[1 + d], 4)
        p[wi] = jax.random.normal(k1, (3 * E, E), jnp.float32) * s   # torch (3E, E), gates [r;z;n]
        p[wh] = jax.random.normal(k2, (3 * E, E), jnp.float32) * s
        p[bi] = jax.random.normal(k3, (3 * E,), jnp.float32) * s
        p[bh] = jax.random.normal(k4, (3 * E,), jnp.float32) * s
    D = 2 * E
    p['w_att'] = jax.random.normal(ks[3], (D,), jnp.float32) * s
    p['b_att'] = jnp.zeros((), jnp.float32)
    Din, H = D + emo_dim, mlp_hidden
    p['w1'] = jax.random.normal(ks[4], (Din, H), jnp.float32) * s
    p['b1'] = jnp.zeros((H,), jnp.float32)
    p['gamma'] = jnp.ones((H,), jnp.float32)
    p['beta'] = jnp.zeros((H,), jnp.float32)
    p['mean'] = jnp.zeros((H,), jnp.float32)
    p['var'] = jnp.ones((H,), jnp.float32)
    p['w2'] = jax.random.normal(ks[5], (H, 1), jnp.float32) * s
    p['b2'] = jnp.zeros((1,), jnp.float32)
    return p


# -----------------------------------------------------------------------------
# Trace-time fusion/packing into 3 weight slabs + SMEM scalar pair.
# -----------------------------------------------------------------------------
def fuse_params(p):
    E = p['emb_table'].shape[1]
    H = p['w1'].shape[1]
    EMO = p['w1'].shape[0] - 2 * E
    GP = _round_up(2 * E, 128)           # per-gate lane pitch (>= 2E, multiple of 128)
    G3 = 3 * GP
    r_whh = _round_up(2 * E, 8)
    gru_rows = _round_up(r_whh + GP + 2, 8)
    EMOP = _round_up(EMO, 8)
    Hp = _round_up(H, 8)

    def gates(w, b):
        return [(w[g * E:(g + 1) * E], b[g * E:(g + 1) * E]) for g in range(3)]

    f_ih, bk_ih = gates(p['w_ih_f'], p['b_ih_f']), gates(p['w_ih_b'], p['b_ih_b'])
    f_hh, bk_hh = gates(p['w_hh_f'], p['b_hh_f']), gates(p['w_hh_b'], p['b_hh_b'])

    # ---- GRU slab: wih / whh / bih / bhh, gate blocks [r|z|n], fwd lanes [0:E], bwd [E:2E] ----
    slab_gru = jnp.zeros((gru_rows, G3), jnp.float32)
    for g in range(3):
        c = g * GP
        # forward: input rows [0:E] (x_t), hidden rows [r_whh : r_whh+E], lanes [c : c+E]
        slab_gru = slab_gru.at[0:E, c:c + E].set(f_ih[g][0].T)
        slab_gru = slab_gru.at[r_whh:r_whh + E, c:c + E].set(f_hh[g][0].T)
        slab_gru = slab_gru.at[r_whh + GP, c:c + E].set(f_ih[g][1])
        slab_gru = slab_gru.at[r_whh + GP + 1, c:c + E].set(f_hh[g][1])
        # backward: input rows [E:2E] (x_{L-1-t}), hidden rows [+E:+2E], lanes [c+E : c+2E]
        slab_gru = slab_gru.at[E:2 * E, c + E:c + 2 * E].set(bk_ih[g][0].T)
        slab_gru = slab_gru.at[r_whh + E:r_whh + 2 * E, c + E:c + 2 * E].set(bk_hh[g][0].T)
        slab_gru = slab_gru.at[r_whh + GP, c + E:c + 2 * E].set(bk_ih[g][1])
        slab_gru = slab_gru.at[r_whh + GP + 1, c + E:c + 2 * E].set(bk_hh[g][1])

    # ---- lane-replicated column slab: w_att column + final Linear column ----
    watt_col = (jnp.zeros((GP,), jnp.float32)
                .at[0:E].set(p['w_att'][:E])
                .at[E:2 * E].set(p['w_att'][E:]))
    col_slab = jnp.zeros((GP + Hp, GP), jnp.float32)
    col_slab = col_slab.at[0:GP, :].set(watt_col[:, None])       # replicate across lanes
    col_slab = col_slab.at[GP:GP + H, :].set(p['w2'][:, 0:1])    # replicate across lanes

    # ---- classifier slab: BatchNorm1d (eval) folded into the first Linear ----
    s = p['gamma'] * lax.rsqrt(p['var'] + 1e-5)
    w1s = p['w1'] * s[None, :]
    b1f = (p['b1'] - p['mean']) * s + p['beta']
    cls_rows = _round_up(GP + EMOP + 1, 8)
    cls_slab = jnp.zeros((cls_rows, H), jnp.float32)
    cls_slab = cls_slab.at[0:2 * E, :].set(w1s[0:2 * E, :])      # rows matching attn lanes
    cls_slab = cls_slab.at[GP:GP + EMO, :].set(w1s[2 * E:, :])   # emotion-feature rows
    cls_slab = cls_slab.at[GP + EMOP, :].set(b1f)

    scal = jnp.stack([p['b_att'], p['b2'][0]])                   # (2,) SMEM scalars

    return {'emb_table': p['emb_table'], 'slab_gru': slab_gru, 'col_slab': col_slab,
            'cls_slab': cls_slab, 'scal': scal}


# -----------------------------------------------------------------------------
# Forward pass: single fused pallas_call; remaining XLA glue is a few KB of packing.
# -----------------------------------------------------------------------------
@jax.jit
def dual_emotion_forward(fp, content, content_masks, content_emotion,
                         comments_emotion, emotion_gap):
    B, L = content.shape
    E = fp['emb_table'].shape[1]
    GP = fp['slab_gru'].shape[1] // 3
    Bp = _round_up(B, 8)                       # sublane-aligned batch (padding rows sliced off)

    emotion_feature = jnp.concatenate(
        [content_emotion, comments_emotion, emotion_gap], axis=1).astype(jnp.float32)
    EMO = emotion_feature.shape[1]
    EMOP = _round_up(EMO, 8)
    emo_p = jnp.zeros((Bp, EMOP), jnp.float32).at[:B, :EMO].set(emotion_feature)

    # TODO(synk): `bert` is an external pretrained encoder passed to __init__; approximated here
    # by a deterministic embedding lookup producing time-major (L, B, emb_dim) features.
    xf = fp['emb_table'][content.T].astype(jnp.float32)          # (L, B, E)
    xf = jnp.pad(xf, ((0, 0), (0, Bp - B), (0, 0)))              # (L, Bp, E)
    xcat = jnp.concatenate([xf, xf[::-1]], axis=-1)              # (L, Bp, 2E): [x_t | x_{L-1-t}]
    x_flat = xcat.reshape(L * Bp, 2 * E)

    mask_t = jnp.zeros((L, Bp), jnp.float32).at[:, :B].set(
        jnp.transpose(content_masks).astype(jnp.float32))
    mask_col = mask_t.reshape(L * Bp, 1)

    out = pl.pallas_call(
        _dual_emotion_kernel,
        out_shape=jax.ShapeDtypeStruct((Bp, GP), jnp.float32),
        in_specs=[_VMEM, _VMEM, _VMEM, _VMEM, _VMEM, _VMEM, _SMEM],
        out_specs=_VMEM,
        scratch_shapes=[pltpu.VMEM((L, Bp, GP), jnp.float32),    # fwd-time-ordered features
                        pltpu.VMEM((L, Bp, GP), jnp.float32)],   # bwd-time-ordered features
    )(x_flat, mask_col, emo_p, fp['slab_gru'], fp['col_slab'], fp['cls_slab'], fp['scal'])
    return out[:B, 0]                                            # .squeeze(1)


if __name__ == "__main__":
    B, L, E, VOCAB, MLP_HIDDEN = 4, 8, 32, 100, 32
    EMO = 38 * 5  # content_emotion(38) + comments_emotion(76) + emotion_gap(76)

    key = jax.random.PRNGKey(0)
    kp, kc, k1, k2, k3 = jax.random.split(key, 5)
    params = init_params(kp, E, VOCAB, MLP_HIDDEN, EMO)
    fused = fuse_params(params)

    content = jax.random.randint(kc, (B, L), 0, VOCAB, dtype=jnp.int32)
    lengths = jnp.array([8, 6, 8, 5], dtype=jnp.int32)
    content_masks = (jnp.arange(L)[None, :] < lengths[:, None]).astype(jnp.float32)
    content_emotion = jax.random.normal(k1, (B, 38), jnp.float32)
    comments_emotion = jax.random.normal(k2, (B, 76), jnp.float32)
    emotion_gap = jax.random.normal(k3, (B, 76), jnp.float32)

    out = dual_emotion_forward(fused, content, content_masks, content_emotion,
                               comments_emotion, emotion_gap)
    out = jax.block_until_ready(out)

    assert out.shape == (B,), out.shape
    assert bool(jnp.all(jnp.isfinite(out)))
    assert bool(jnp.all((out >= 0.0) & (out <= 1.0)))
    print("KERNEL_OK")
</pallas_src>

<mosaic_0001>
module attributes {stable_mosaic.version = 11 : i64} {
  func.func @_dual_emotion_kernel(%arg0: memref<64x64xf32, #tpu.memory_space<vmem>>, %arg1: memref<64x1xf32, #tpu.memory_space<vmem>>, %arg2: memref<8x192xf32, #tpu.memory_space<vmem>>, %arg3: memref<200x384xf32, #tpu.memory_space<vmem>>, %arg4: memref<160x128xf32, #tpu.memory_space<vmem>>, %arg5: memref<328x32xf32, #tpu.memory_space<vmem>>, %arg6: memref<2xf32, #tpu.memory_space<smem>>, %arg7: memref<8x128xf32, #tpu.memory_space<vmem>>, %arg8: memref<8x8x128xf32, #tpu.memory_space<vmem>>, %arg9: memref<8x8x128xf32, #tpu.memory_space<vmem>>) attributes {dimension_semantics = [], scalar_prefetch = 0 : i64, scratch_operands = 2 : i64, tpu.core_type = #tpu.core_type<tc>} {
    %c0 = arith.constant 0 : index
    %c0_0 = arith.constant 0 : index
    %0 = vector.load %arg3[%c0, %c0_0] : memref<200x384xf32, #tpu.memory_space<vmem>>, vector<64x384xf32>
    %c64 = arith.constant 64 : index
    %c0_1 = arith.constant 0 : index
    %1 = vector.load %arg3[%c64, %c0_1] : memref<200x384xf32, #tpu.memory_space<vmem>>, vector<128x384xf32>
    %c192 = arith.constant 192 : index
    %c0_2 = arith.constant 0 : index
    %2 = vector.load %arg3[%c192, %c0_2] : memref<200x384xf32, #tpu.memory_space<vmem>>, vector<1x384xf32>
    %c193 = arith.constant 193 : index
    %c0_3 = arith.constant 0 : index
    %3 = vector.load %arg3[%c193, %c0_3] : memref<200x384xf32, #tpu.memory_space<vmem>>, vector<1x384xf32>
    %c0_4 = arith.constant 0 : index
    %c0_5 = arith.constant 0 : index
    %4 = vector.load %arg0[%c0_4, %c0_5] : memref<64x64xf32, #tpu.memory_space<vmem>>, vector<64x64xf32>
    %cst = arith.constant dense<0.000000e+00> : vector<64x384xf32>
    %5 = tpu.matmul %4, %0, %cst {dimension_numbers = #tpu.dot_dimension_numbers<[1], [0], [0], [1], [0, 0, 1, 1], [], []>} : vector<64x64xf32>, vector<64x384xf32>, vector<64x384xf32> -> vector<64x384xf32>
    %6 = vector.broadcast %2 : vector<1x384xf32> to vector<64x384xf32>
    %7 = arith.addf %5, %6 : vector<64x384xf32>
    %cst_6 = arith.constant 0.000000e+00 : f32
    %8 = vector.broadcast %cst_6 : f32 to vector<8x128xf32>
    %9 = vector.extract_strided_slice %7 {offsets = [0, 0], sizes = [8, 384], strides = [1, 1]} : vector<64x384xf32> to vector<8x384xf32>
    %cst_7 = arith.constant dense<0.000000e+00> : vector<8x384xf32>
    %10 = tpu.matmul %8, %1, %cst_7 {dimension_numbers = #tpu.dot_dimension_numbers<[1], [0], [0], [1], [0, 0, 1, 1], [], []>} : vector<8x128xf32>, vector<128x384xf32>, vector<8x384xf32> -> vector<8x384xf32>
    %11 = vector.broadcast %3 : vector<1x384xf32> to vector<8x384xf32>
    %12 = arith.addf %10, %11 : vector<8x384xf32>
    %13 = vector.extract_strided_slice %9 {offsets = [0, 0], sizes = [8, 128], strides = [1, 1]} : vector<8x384xf32> to vector<8x128xf32>
    %14 = vector.extract_strided_slice %12 {offsets = [0, 0], sizes = [8, 128], strides = [1, 1]} : vector<8x384xf32> to vector<8x128xf32>
    %15 = arith.addf %13, %14 : vector<8x128xf32>
    %16 = arith.negf %15 : vector<8x128xf32>
    %17 = math.exp %16 : vector<8x128xf32>
    %cst_8 = arith.constant 1.000000e+00 : f32
    %18 = vector.broadcast %cst_8 : f32 to vector<8x128xf32>
    %19 = arith.addf %18, %17 : vector<8x128xf32>
    %20 = arith.divf %18, %19 : vector<8x128xf32>
    %21 = vector.extract_strided_slice %9 {offsets = [0, 128], sizes = [8, 128], strides = [1, 1]} : vector<8x384xf32> to vector<8x128xf32>
    %22 = vector.extract_strided_slice %12 {offsets = [0, 128], sizes = [8, 128], strides = [1, 1]} : vector<8x384xf32> to vector<8x128xf32>
    %23 = arith.addf %21, %22 : vector<8x128xf32>
    %24 = arith.negf %23 : vector<8x128xf32>
    %25 = math.exp %24 : vector<8x128xf32>
    %cst_9 = arith.constant 1.000000e+00 : f32
    %26 = vector.broadcast %cst_9 : f32 to vector<8x128xf32>
    %27 = arith.addf %26, %25 : vector<8x128xf32>
    %28 = arith.divf %26, %27 : vector<8x128xf32>
    %29 = vector.extract_strided_slice %9 {offsets = [0, 256], sizes = [8, 128], strides = [1, 1]} : vector<8x384xf32> to vector<8x128xf32>
    %30 = vector.extract_strided_slice %12 {offsets = [0, 256], sizes = [8, 128], strides = [1, 1]} : vector<8x384xf32> to vector<8x128xf32>
    %31 = arith.mulf %20, %30 : vector<8x128xf32>
    %32 = arith.addf %29, %31 : vector<8x128xf32>
    %33 = math.tanh %32 : vector<8x128xf32>
    %cst_10 = arith.constant 1.000000e+00 : f32
    %34 = vector.broadcast %cst_10 : f32 to vector<8x128xf32>
    %35 = arith.subf %34, %28 : vector<8x128xf32>
    %36 = arith.mulf %35, %33 : vector<8x128xf32>
    %37 = arith.mulf %28, %8 : vector<8x128xf32>
    %38 = arith.addf %36, %37 : vector<8x128xf32>
    %c0_11 = arith.constant 0 : index
    %c0_12 = arith.constant 0 : index
    %c0_13 = arith.constant 0 : index
    %39 = vector.load %arg8[%c0_11, %c0_12, %c0_13] : memref<8x8x128xf32, #tpu.memory_space<vmem>>, vector<1x8x128xf32>
    %40 = vector.shape_cast %39 : vector<1x8x128xf32> to vector<8x128xf32>
    %41 = vector.shape_cast %38 : vector<8x128xf32> to vector<1x8x128xf32>
    tpu.vector_store %arg8[%c0_11, %c0_12, %c0_13], %41 {strides = array<i32>} : memref<8x8x128xf32, #tpu.memory_space<vmem>>, vector<1x8x128xf32>,
    %c7 = arith.constant 7 : index
    %c0_14 = arith.constant 0 : index
    %c0_15 = arith.constant 0 : index
    %42 = vector.load %arg9[%c7, %c0_14, %c0_15] : memref<8x8x128xf32, #tpu.memory_space<vmem>>, vector<1x8x128xf32>
    %43 = vector.shape_cast %42 : vector<1x8x128xf32> to vector<8x128xf32>
    %44 = vector.shape_cast %38 : vector<8x128xf32> to vector<1x8x128xf32>
    tpu.vector_store %arg9[%c7, %c0_14, %c0_15], %44 {strides = array<i32>} : memref<8x8x128xf32, #tpu.memory_space<vmem>>, vector<1x8x128xf32>,
    %45 = vector.extract_strided_slice %7 {offsets = [8, 0], sizes = [8, 384], strides = [1, 1]} : vector<64x384xf32> to vector<8x384xf32>
    %cst_16 = arith.constant dense<0.000000e+00> : vector<8x384xf32>
    %46 = tpu.matmul %38, %1, %cst_16 {dimension_numbers = #tpu.dot_dimension_numbers<[1], [0], [0], [1], [0, 0, 1, 1], [], []>} : vector<8x128xf32>, vector<128x384xf32>, vector<8x384xf32> -> vector<8x384xf32>
    %47 = vector.broadcast %3 : vector<1x384xf32> to vector<8x384xf32>
    %48 = arith.addf %46, %47 : vector<8x384xf32>
    %49 = vector.extract_strided_slice %45 {offsets = [0, 0], sizes = [8, 128], strides = [1, 1]} : vector<8x384xf32> to vector<8x128xf32>
    %50 = vector.extract_strided_slice %48 {offsets = [0, 0], sizes = [8, 128], strides = [1, 1]} : vector<8x384xf32> to vector<8x128xf32>
    %51 = arith.addf %49, %50 : vector<8x128xf32>
    %52 = arith.negf %51 : vector<8x128xf32>
    %53 = math.exp %52 : vector<8x128xf32>
    %cst_17 = arith.constant 1.000000e+00 : f32
    %54 = vector.broadcast %cst_17 : f32 to vector<8x128xf32>
    %55 = arith.addf %54, %53 : vector<8x128xf32>
    %56 = arith.divf %54, %55 : vector<8x128xf32>
    %57 = vector.extract_strided_slice %45 {offsets = [0, 128], sizes = [8, 128], strides = [1, 1]} : vector<8x384xf32> to vector<8x128xf32>
    %58 = vector.extract_strided_slice %48 {offsets = [0, 128], sizes = [8, 128], strides = [1, 1]} : vector<8x384xf32> to vector<8x128xf32>
    %59 = arith.addf %57, %58 : vector<8x128xf32>
    %60 = arith.negf %59 : vector<8x128xf32>
    %61 = math.exp %60 : vector<8x128xf32>
    %cst_18 = arith.constant 1.000000e+00 : f32
    %62 = vector.broadcast %cst_18 : f32 to vector<8x128xf32>
    %63 = arith.addf %62, %61 : vector<8x128xf32>
    %64 = arith.divf %62, %63 : vector<8x128xf32>
    %65 = vector.extract_strided_slice %45 {offsets = [0, 256], sizes = [8, 128], strides = [1, 1]} : vector<8x384xf32> to vector<8x128xf32>
    %66 = vector.extract_strided_slice %48 {offsets = [0, 256], sizes = [8, 128], strides = [1, 1]} : vector<8x384xf32> to vector<8x128xf32>
    %67 = arith.mulf %56, %66 : vector<8x128xf32>
    %68 = arith.addf %65, %67 : vector<8x128xf32>
    %69 = math.tanh %68 : vector<8x128xf32>
    %cst_19 = arith.constant 1.000000e+00 : f32
    %70 = vector.broadcast %cst_19 : f32 to vector<8x128xf32>
    %71 = arith.subf %70, %64 : vector<8x128xf32>
    %72 = arith.mulf %71, %69 : vector<8x128xf32>
    %73 = arith.mulf %64, %38 : vector<8x128xf32>
    %74 = arith.addf %72, %73 : vector<8x128xf32>
    %c1 = arith.constant 1 : index
    %c0_20 = arith.constant 0 : index
    %c0_21 = arith.constant 0 : index
    %75 = vector.load %arg8[%c1, %c0_20, %c0_21] : memref<8x8x128xf32, #tpu.memory_space<vmem>>, vector<1x8x128xf32>
    %76 = vector.shape_cast %75 : vector<1x8x128xf32> to vector<8x128xf32>
    %77 = vector.shape_cast %74 : vector<8x128xf32> to vector<1x8x128xf32>
    tpu.vector_store %arg8[%c1, %c0_20, %c0_21], %77 {strides = array<i32>} : memref<8x8x128xf32, #tpu.memory_space<vmem>>, vector<1x8x128xf32>,
    %c6 = arith.constant 6 : index
    %c0_22 = arith.constant 0 : index
    %c0_23 = arith.constant 0 : index
    %78 = vector.load %arg9[%c6, %c0_22, %c0_23] : memref<8x8x128xf32, #tpu.memory_space<vmem>>, vector<1x8x128xf32>
    %79 = vector.shape_cast %78 : vector<1x8x128xf32> to vector<8x128xf32>
    %80 = vector.shape_cast %74 : vector<8x128xf32> to vector<1x8x128xf32>
    tpu.vector_store %arg9[%c6, %c0_22, %c0_23], %80 {strides = array<i32>} : memref<8x8x128xf32, #tpu.memory_space<vmem>>, vector<1x8x128xf32>,
    %81 = vector.extract_strided_slice %7 {offsets = [16, 0], sizes = [8, 384], strides = [1, 1]} : vector<64x384xf32> to vector<8x384xf32>
    %cst_24 = arith.constant dense<0.000000e+00> : vector<8x384xf32>
    %82 = tpu.matmul %74, %1, %cst_24 {dimension_numbers = #tpu.dot_dimension_numbers<[1], [0], [0], [1], [0, 0, 1, 1], [], []>} : vector<8x128xf32>, vector<128x384xf32>, vector<8x384xf32> -> vector<8x384xf32>
    %83 = vector.broadcast %3 : vector<1x384xf32> to vector<8x384xf32>
    %84 = arith.addf %82, %83 : vector<8x384xf32>
    %85 = vector.extract_strided_slice %81 {offsets = [0, 0], sizes = [8, 128], strides = [1, 1]} : vector<8x384xf32> to vector<8x128xf32>
    %86 = vector.extract_strided_slice %84 {offsets = [0, 0], sizes = [8, 128], strides = [1, 1]} : vector<8x384xf32> to vector<8x128xf32>
    %87 = arith.addf %85, %86 : vector<8x128xf32>
    %88 = arith.negf %87 : vector<8x128xf32>
    %89 = math.exp %88 : vector<8x128xf32>
    %cst_25 = arith.constant 1.000000e+00 : f32
    %90 = vector.broadcast %cst_25 : f32 to vector<8x128xf32>
    %91 = arith.addf %90, %89 : vector<8x128xf32>
    %92 = arith.divf %90, %91 : vector<8x128xf32>
    %93 = vector.extract_strided_slice %81 {offsets = [0, 128], sizes = [8, 128], strides = [1, 1]} : vector<8x384xf32> to vector<8x128xf32>
    %94 = vector.extract_strided_slice %84 {offsets = [0, 128], sizes = [8, 128], strides = [1, 1]} : vector<8x384xf32> to vector<8x128xf32>
    %95 = arith.addf %93, %94 : vector<8x128xf32>
    %96 = arith.negf %95 : vector<8x128xf32>
    %97 = math.exp %96 : vector<8x128xf32>
    %cst_26 = arith.constant 1.000000e+00 : f32
    %98 = vector.broadcast %cst_26 : f32 to vector<8x128xf32>
    %99 = arith.addf %98, %97 : vector<8x128xf32>
    %100 = arith.divf %98, %99 : vector<8x128xf32>
    %101 = vector.extract_strided_slice %81 {offsets = [0, 256], sizes = [8, 128], strides = [1, 1]} : vector<8x384xf32> to vector<8x128xf32>
    %102 = vector.extract_strided_slice %84 {offsets = [0, 256], sizes = [8, 128], strides = [1, 1]} : vector<8x384xf32> to vector<8x128xf32>
    %103 = arith.mulf %92, %102 : vector<8x128xf32>
    %104 = arith.addf %101, %103 : vector<8x128xf32>
    %105 = math.tanh %104 : vector<8x128xf32>
    %cst_27 = arith.constant 1.000000e+00 : f32
    %106 = vector.broadcast %cst_27 : f32 to vector<8x128xf32>
    %107 = arith.subf %106, %100 : vector<8x128xf32>
    %108 = arith.mulf %107, %105 : vector<8x128xf32>
    %109 = arith.mulf %100, %74 : vector<8x128xf32>
    %110 = arith.addf %108, %109 : vector<8x128xf32>
    %c2 = arith.constant 2 : index
    %c0_28 = arith.constant 0 : index
    %c0_29 = arith.constant 0 : index
    %111 = vector.load %arg8[%c2, %c0_28, %c0_29] : memref<8x8x128xf32, #tpu.memory_space<vmem>>, vector<1x8x128xf32>
    %112 = vector.shape_cast %111 : vector<1x8x128xf32> to vector<8x128xf32>
    %113 = vector.shape_cast %110 : vector<8x128xf32> to vector<1x8x128xf32>
    tpu.vector_store %arg8[%c2, %c0_28, %c0_29], %113 {strides = array<i32>} : memref<8x8x128xf32, #tpu.memory_space<vmem>>, vector<1x8x128xf32>,
    %c5 = arith.constant 5 : index
    %c0_30 = arith.constant 0 : index
    %c0_31 = arith.constant 0 : index
    %114 = vector.load %arg9[%c5, %c0_30, %c0_31] : memref<8x8x128xf32, #tpu.memory_space<vmem>>, vector<1x8x128xf32>
    %115 = vector.shape_cast %114 : vector<1x8x128xf32> to vector<8x128xf32>
    %116 = vector.shape_cast %110 : vector<8x128xf32> to vector<1x8x128xf32>
    tpu.vector_store %arg9[%c5, %c0_30, %c0_31], %116 {strides = array<i32>} : memref<8x8x128xf32, #tpu.memory_space<vmem>>, vector<1x8x128xf32>,
    %117 = vector.extract_strided_slice %7 {offsets = [24, 0], sizes = [8, 384], strides = [1, 1]} : vector<64x384xf32> to vector<8x384xf32>
    %cst_32 = arith.constant dense<0.000000e+00> : vector<8x384xf32>
    %118 = tpu.matmul %110, %1, %cst_32 {dimension_numbers = #tpu.dot_dimension_numbers<[1], [0], [0], [1], [0, 0, 1, 1], [], []>} : vector<8x128xf32>, vector<128x384xf32>, vector<8x384xf32> -> vector<8x384xf32>
    %119 = vector.broadcast %3 : vector<1x384xf32> to vector<8x384xf32>
    %120 = arith.addf %118, %119 : vector<8x384xf32>
    %121 = vector.extract_strided_slice %117 {offsets = [0, 0], sizes = [8, 128], strides = [1, 1]} : vector<8x384xf32> to vector<8x128xf32>
    %122 = vector.extract_strided_slice %120 {offsets = [0, 0], sizes = [8, 128], strides = [1, 1]} : vector<8x384xf32> to vector<8x128xf32>
    %123 = arith.addf %121, %122 : vector<8x128xf32>
    %124 = arith.negf %123 : vector<8x128xf32>
    %125 = math.exp %124 : vector<8x128xf32>
    %cst_33 = arith.constant 1.000000e+00 : f32
    %126 = vector.broadcast %cst_33 : f32 to vector<8x128xf32>
    %127 = arith.addf %126, %125 : vector<8x128xf32>
    %128 = arith.divf %126, %127 : vector<8x128xf32>
    %129 = vector.extract_strided_slice %117 {offsets = [0, 128], sizes = [8, 128], strides = [1, 1]} : vector<8x384xf32> to vector<8x128xf32>
    %130 = vector.extract_strided_slice %120 {offsets = [0, 128], sizes = [8, 128], strides = [1, 1]} : vector<8x384xf32> to vector<8x128xf32>
    %131 = arith.addf %129, %130 : vector<8x128xf32>
    %132 = arith.negf %131 : vector<8x128xf32>
    %133 = math.exp %132 : vector<8x128xf32>
    %cst_34 = arith.constant 1.000000e+00 : f32
    %134 = vector.broadcast %cst_34 : f32 to vector<8x128xf32>
    %135 = arith.addf %134, %133 : vector<8x128xf32>
    %136 = arith.divf %134, %135 : vector<8x128xf32>
    %137 = vector.extract_strided_slice %117 {offsets = [0, 256], sizes = [8, 128], strides = [1, 1]} : vector<8x384xf32> to vector<8x128xf32>
    %138 = vector.extract_strided_slice %120 {offsets = [0, 256], sizes = [8, 128], strides = [1, 1]} : vector<8x384xf32> to vector<8x128xf32>
    %139 = arith.mulf %128, %138 : vector<8x128xf32>
    %140 = arith.addf %137, %139 : vector<8x128xf32>
    %141 = math.tanh %140 : vector<8x128xf32>
    %cst_35 = arith.constant 1.000000e+00 : f32
    %142 = vector.broadcast %cst_35 : f32 to vector<8x128xf32>
    %143 = arith.subf %142, %136 : vector<8x128xf32>
    %144 = arith.mulf %143, %141 : vector<8x128xf32>
    %145 = arith.mulf %136, %110 : vector<8x128xf32>
    %146 = arith.addf %144, %145 : vector<8x128xf32>
    %c3 = arith.constant 3 : index
    %c0_36 = arith.constant 0 : index
    %c0_37 = arith.constant 0 : index
    %147 = vector.load %arg8[%c3, %c0_36, %c0_37] : memref<8x8x128xf32, #tpu.memory_space<vmem>>, vector<1x8x128xf32>
    %148 = vector.shape_cast %147 : vector<1x8x128xf32> to vector<8x128xf32>
    %149 = vector.shape_cast %146 : vector<8x128xf32> to vector<1x8x128xf32>
    tpu.vector_store %arg8[%c3, %c0_36, %c0_37], %149 {strides = array<i32>} : memref<8x8x128xf32, #tpu.memory_space<vmem>>, vector<1x8x128xf32>,
    %c4 = arith.constant 4 : index
    %c0_38 = arith.constant 0 : index
    %c0_39 = arith.constant 0 : index
    %150 = vector.load %arg9[%c4, %c0_38, %c0_39] : memref<8x8x128xf32, #tpu.memory_space<vmem>>, vector<1x8x128xf32>
    %151 = vector.shape_cast %150 : vector<1x8x128xf32> to vector<8x128xf32>
    %152 = vector.shape_cast %146 : vector<8x128xf32> to vector<1x8x128xf32>
    tpu.vector_store %arg9[%c4, %c0_38, %c0_39], %152 {strides = array<i32>} : memref<8x8x128xf32, #tpu.memory_space<vmem>>, vector<1x8x128xf32>,
    %153 = vector.extract_strided_slice %7 {offsets = [32, 0], sizes = [8, 384], strides = [1, 1]} : vector<64x384xf32> to vector<8x384xf32>
    %cst_40 = arith.constant dense<0.000000e+00> : vector<8x384xf32>
    %154 = tpu.matmul %146, %1, %cst_40 {dimension_numbers = #tpu.dot_dimension_numbers<[1], [0], [0], [1], [0, 0, 1, 1], [], []>} : vector<8x128xf32>, vector<128x384xf32>, vector<8x384xf32> -> vector<8x384xf32>
    %155 = vector.broadcast %3 : vector<1x384xf32> to vector<8x384xf32>
    %156 = arith.addf %154, %155 : vector<8x384xf32>
    %157 = vector.extract_strided_slice %153 {offsets = [0, 0], sizes = [8, 128], strides = [1, 1]} : vector<8x384xf32> to vector<8x128xf32>
    %158 = vector.extract_strided_slice %156 {offsets = [0, 0], sizes = [8, 128], strides = [1, 1]} : vector<8x384xf32> to vector<8x128xf32>
    %159 = arith.addf %157, %158 : vector<8x128xf32>
    %160 = arith.negf %159 : vector<8x128xf32>
    %161 = math.exp %160 : vector<8x128xf32>
    %cst_41 = arith.constant 1.000000e+00 : f32
    %162 = vector.broadcast %cst_41 : f32 to vector<8x128xf32>
    %163 = arith.addf %162, %161 : vector<8x128xf32>
    %164 = arith.divf %162, %163 : vector<8x128xf32>
    %165 = vector.extract_strided_slice %153 {offsets = [0, 128], sizes = [8, 128], strides = [1, 1]} : vector<8x384xf32> to vector<8x128xf32>
    %166 = vector.extract_strided_slice %156 {offsets = [0, 128], sizes = [8, 128], strides = [1, 1]} : vector<8x384xf32> to vector<8x128xf32>
    %167 = arith.addf %165, %166 : vector<8x128xf32>
    %168 = arith.negf %167 : vector<8x128xf32>
    %169 = math.exp %168 : vector<8x128xf32>
    %cst_42 = arith.constant 1.000000e+00 : f32
    %170 = vector.broadcast %cst_42 : f32 to vector<8x128xf32>
    %171 = arith.addf %170, %169 : vector<8x128xf32>
    %172 = arith.divf %170, %171 : vector<8x128xf32>
    %173 = vector.extract_strided_slice %153 {offsets = [0, 256], sizes = [8, 128], strides = [1, 1]} : vector<8x384xf32> to vector<8x128xf32>
    %174 = vector.extract_strided_slice %156 {offsets = [0, 256], sizes = [8, 128], strides = [1, 1]} : vector<8x384xf32> to vector<8x128xf32>
    %175 = arith.mulf %164, %174 : vector<8x128xf32>
    %176 = arith.addf %173, %175 : vector<8x128xf32>
    %177 = math.tanh %176 : vector<8x128xf32>
    %cst_43 = arith.constant 1.000000e+00 : f32
    %178 = vector.broadcast %cst_43 : f32 to vector<8x128xf32>
    %179 = arith.subf %178, %172 : vector<8x128xf32>
    %180 = arith.mulf %179, %177 : vector<8x128xf32>
    %181 = arith.mulf %172, %146 : vector<8x128xf32>
    %182 = arith.addf %180, %181 : vector<8x128xf32>
    %c4_44 = arith.constant 4 : index
    %c0_45 = arith.constant 0 : index
    %c0_46 = arith.constant 0 : index
    %183 = vector.load %arg8[%c4_44, %c0_45, %c0_46] : memref<8x8x128xf32, #tpu.memory_space<vmem>>, vector<1x8x128xf32>
    %184 = vector.shape_cast %183 : vector<1x8x128xf32> to vector<8x128xf32>
    %185 = vector.shape_cast %182 : vector<8x128xf32> to vector<1x8x128xf32>
    tpu.vector_store %arg8[%c4_44, %c0_45, %c0_46], %185 {strides = array<i32>} : memref<8x8x128xf32, #tpu.memory_space<vmem>>, vector<1x8x128xf32>,
    %c3_47 = arith.constant 3 : index
    %c0_48 = arith.constant 0 : index
    %c0_49 = arith.constant 0 : index
    %186 = vector.load %arg9[%c3_47, %c0_48, %c0_49] : memref<8x8x128xf32, #tpu.memory_space<vmem>>, vector<1x8x128xf32>
    %187 = vector.shape_cast %186 : vector<1x8x128xf32> to vector<8x128xf32>
    %188 = vector.shape_cast %182 : vector<8x128xf32> to vector<1x8x128xf32>
    tpu.vector_store %arg9[%c3_47, %c0_48, %c0_49], %188 {strides = array<i32>} : memref<8x8x128xf32, #tpu.memory_space<vmem>>, vector<1x8x128xf32>,
    %189 = vector.extract_strided_slice %7 {offsets = [40, 0], sizes = [8, 384], strides = [1, 1]} : vector<64x384xf32> to vector<8x384xf32>
    %cst_50 = arith.constant dense<0.000000e+00> : vector<8x384xf32>
    %190 = tpu.matmul %182, %1, %cst_50 {dimension_numbers = #tpu.dot_dimension_numbers<[1], [0], [0], [1], [0, 0, 1, 1], [], []>} : vector<8x128xf32>, vector<128x384xf32>, vector<8x384xf32> -> vector<8x384xf32>
    %191 = vector.broadcast %3 : vector<1x384xf32> to vector<8x384xf32>
    %192 = arith.addf %190, %191 : vector<8x384xf32>
    %193 = vector.extract_strided_slice %189 {offsets = [0, 0], sizes = [8, 128], strides = [1, 1]} : vector<8x384xf32> to vector<8x128xf32>
    %194 = vector.extract_strided_slice %192 {offsets = [0, 0], sizes = [8, 128], strides = [1, 1]} : vector<8x384xf32> to vector<8x128xf32>
    %195 = arith.addf %193, %194 : vector<8x128xf32>
    %196 = arith.negf %195 : vector<8x128xf32>
    %197 = math.exp %196 : vector<8x128xf32>
    %cst_51 = arith.constant 1.000000e+00 : f32
    %198 = vector.broadcast %cst_51 : f32 to vector<8x128xf32>
    %199 = arith.addf %198, %197 : vector<8x128xf32>
    %200 = arith.divf %198, %199 : vector<8x128xf32>
    %201 = vector.extract_strided_slice %189 {offsets = [0, 128], sizes = [8, 128], strides = [1, 1]} : vector<8x384xf32> to vector<8x128xf32>
    %202 = vector.extract_strided_slice %192 {offsets = [0, 128], sizes = [8, 128], strides = [1, 1]} : vector<8x384xf32> to vector<8x128xf32>
    %203 = arith.addf %201, %202 : vector<8x128xf32>
    %204 = arith.negf %203 : vector<8x128xf32>
    %205 = math.exp %204 : vector<8x128xf32>
    %cst_52 = arith.constant 1.000000e+00 : f32
    %206 = vector.broadcast %cst_52 : f32 to vector<8x128xf32>
    %207 = arith.addf %206, %205 : vector<8x128xf32>
    %208 = arith.divf %206, %207 : vector<8x128xf32>
    %209 = vector.extract_strided_slice %189 {offsets = [0, 256], sizes = [8, 128], strides = [1, 1]} : vector<8x384xf32> to vector<8x128xf32>
    %210 = vector.extract_strided_slice %192 {offsets = [0, 256], sizes = [8, 128], strides = [1, 1]} : vector<8x384xf32> to vector<8x128xf32>
    %211 = arith.mulf %200, %210 : vector<8x128xf32>
    %212 = arith.addf %209, %211 : vector<8x128xf32>
    %213 = math.tanh %212 : vector<8x128xf32>
    %cst_53 = arith.constant 1.000000e+00 : f32
    %214 = vector.broadcast %cst_53 : f32 to vector<8x128xf32>
    %215 = arith.subf %214, %208 : vector<8x128xf32>
    %216 = arith.mulf %215, %213 : vector<8x128xf32>
    %217 = arith.mulf %208, %182 : vector<8x128xf32>
    %218 = arith.addf %216, %217 : vector<8x128xf32>
    %c5_54 = arith.constant 5 : index
    %c0_55 = arith.constant 0 : index
    %c0_56 = arith.constant 0 : index
    %219 = vector.load %arg8[%c5_54, %c0_55, %c0_56] : memref<8x8x128xf32, #tpu.memory_space<vmem>>, vector<1x8x128xf32>
    %220 = vector.shape_cast %219 : vector<1x8x128xf32> to vector<8x128xf32>
    %221 = vector.shape_cast %218 : vector<8x128xf32> to vector<1x8x128xf32>
    tpu.vector_store %arg8[%c5_54, %c0_55, %c0_56], %221 {strides = array<i32>} : memref<8x8x128xf32, #tpu.memory_space<vmem>>, vector<1x8x128xf32>,
    %c2_57 = arith.constant 2 : index
    %c0_58 = arith.constant 0 : index
    %c0_59 = arith.constant 0 : index
    %222 = vector.load %arg9[%c2_57, %c0_58, %c0_59] : memref<8x8x128xf32, #tpu.memory_space<vmem>>, vector<1x8x128xf32>
    %223 = vector.shape_cast %222 : vector<1x8x128xf32> to vector<8x128xf32>
    %224 = vector.shape_cast %218 : vector<8x128xf32> to vector<1x8x128xf32>
    tpu.vector_store %arg9[%c2_57, %c0_58, %c0_59], %224 {strides = array<i32>} : memref<8x8x128xf32, #tpu.memory_space<vmem>>, vector<1x8x128xf32>,
    %225 = vector.extract_strided_slice %7 {offsets = [48, 0], sizes = [8, 384], strides = [1, 1]} : vector<64x384xf32> to vector<8x384xf32>
    %cst_60 = arith.constant dense<0.000000e+00> : vector<8x384xf32>
    %226 = tpu.matmul %218, %1, %cst_60 {dimension_numbers = #tpu.dot_dimension_numbers<[1], [0], [0], [1], [0, 0, 1, 1], [], []>} : vector<8x128xf32>, vector<128x384xf32>, vector<8x384xf32> -> vector<8x384xf32>
    %227 = vector.broadcast %3 : vector<1x384xf32> to vector<8x384xf32>
    %228 = arith.addf %226, %227 : vector<8x384xf32>
    %229 = vector.extract_strided_slice %225 {offsets = [0, 0], sizes = [8, 128], strides = [1, 1]} : vector<8x384xf32> to vector<8x128xf32>
    %230 = vector.extract_strided_slice %228 {offsets = [0, 0], sizes = [8, 128], strides = [1, 1]} : vector<8x384xf32> to vector<8x128xf32>
    %231 = arith.addf %229, %230 : vector<8x128xf32>
    %232 = arith.negf %231 : vector<8x128xf32>
    %233 = math.exp %232 : vector<8x128xf32>
    %cst_61 = arith.constant 1.000000e+00 : f32
    %234 = vector.broadcast %cst_61 : f32 to vector<8x128xf32>
    %235 = arith.addf %234, %233 : vector<8x128xf32>
    %236 = arith.divf %234, %235 : vector<8x128xf32>
    %237 = vector.extract_strided_slice %225 {offsets = [0, 128], sizes = [8, 128], strides = [1, 1]} : vector<8x384xf32> to vector<8x128xf32>
    %238 = vector.extract_strided_slice %228 {offsets = [0, 128], sizes = [8, 128], strides = [1, 1]} : vector<8x384xf32> to vector<8x128xf32>
    %239 = arith.addf %237, %238 : vector<8x128xf32>
    %240 = arith.negf %239 : vector<8x128xf32>
    %241 = math.exp %240 : vector<8x128xf32>
    %cst_62 = arith.constant 1.000000e+00 : f32
    %242 = vector.broadcast %cst_62 : f32 to vector<8x128xf32>
    %243 = arith.addf %242, %241 : vector<8x128xf32>
    %244 = arith.divf %242, %243 : vector<8x128xf32>
    %245 = vector.extract_strided_slice %225 {offsets = [0, 256], sizes = [8, 128], strides = [1, 1]} : vector<8x384xf32> to vector<8x128xf32>
    %246 = vector.extract_strided_slice %228 {offsets = [0, 256], sizes = [8, 128], strides = [1, 1]} : vector<8x384xf32> to vector<8x128xf32>
    %247 = arith.mulf %236, %246 : vector<8x128xf32>
    %248 = arith.addf %245, %247 : vector<8x128xf32>
    %249 = math.tanh %248 : vector<8x128xf32>
    %cst_63 = arith.constant 1.000000e+00 : f32
    %250 = vector.broadcast %cst_63 : f32 to vector<8x128xf32>
    %251 = arith.subf %250, %244 : vector<8x128xf32>
    %252 = arith.mulf %251, %249 : vector<8x128xf32>
    %253 = arith.mulf %244, %218 : vector<8x128xf32>
    %254 = arith.addf %252, %253 : vector<8x128xf32>
    %c6_64 = arith.constant 6 : index
    %c0_65 = arith.constant 0 : index
    %c0_66 = arith.constant 0 : index
    %255 = vector.load %arg8[%c6_64, %c0_65, %c0_66] : memref<8x8x128xf32, #tpu.memory_space<vmem>>, vector<1x8x128xf32>
    %256 = vector.shape_cast %255 : vector<1x8x128xf32> to vector<8x128xf32>
    %257 = vector.shape_cast %254 : vector<8x128xf32> to vector<1x8x128xf32>
    tpu.vector_store %arg8[%c6_64, %c0_65, %c0_66], %257 {strides = array<i32>} : memref<8x8x128xf32, #tpu.memory_space<vmem>>, vector<1x8x128xf32>,
    %c1_67 = arith.constant 1 : index
    %c0_68 = arith.constant 0 : index
    %c0_69 = arith.constant 0 : index
    %258 = vector.load %arg9[%c1_67, %c0_68, %c0_69] : memref<8x8x128xf32, #tpu.memory_space<vmem>>, vector<1x8x128xf32>
    %259 = vector.shape_cast %258 : vector<1x8x128xf32> to vector<8x128xf32>
    %260 = vector.shape_cast %254 : vector<8x128xf32> to vector<1x8x128xf32>
    tpu.vector_store %arg9[%c1_67, %c0_68, %c0_69], %260 {strides = array<i32>} : memref<8x8x128xf32, #tpu.memory_space<vmem>>, vector<1x8x128xf32>,
    %261 = vector.extract_strided_slice %7 {offsets = [56, 0], sizes = [8, 384], strides = [1, 1]} : vector<64x384xf32> to vector<8x384xf32>
    %cst_70 = arith.constant dense<0.000000e+00> : vector<8x384xf32>
    %262 = tpu.matmul %254, %1, %cst_70 {dimension_numbers = #tpu.dot_dimension_numbers<[1], [0], [0], [1], [0, 0, 1, 1], [], []>} : vector<8x128xf32>, vector<128x384xf32>, vector<8x384xf32> -> vector<8x384xf32>
    %263 = vector.broadcast %3 : vector<1x384xf32> to vector<8x384xf32>
    %264 = arith.addf %262, %263 : vector<8x384xf32>
    %265 = vector.extract_strided_slice %261 {offsets = [0, 0], sizes = [8, 128], strides = [1, 1]} : vector<8x384xf32> to vector<8x128xf32>
    %266 = vector.extract_strided_slice %264 {offsets = [0, 0], sizes = [8, 128], strides = [1, 1]} : vector<8x384xf32> to vector<8x128xf32>
    %267 = arith.addf %265, %266 : vector<8x128xf32>
    %268 = arith.negf %267 : vector<8x128xf32>
    %269 = math.exp %268 : vector<8x128xf32>
    %cst_71 = arith.constant 1.000000e+00 : f32
    %270 = vector.broadcast %cst_71 : f32 to vector<8x128xf32>
    %271 = arith.addf %270, %269 : vector<8x128xf32>
    %272 = arith.divf %270, %271 : vector<8x128xf32>
    %273 = vector.extract_strided_slice %261 {offsets = [0, 128], sizes = [8, 128], strides = [1, 1]} : vector<8x384xf32> to vector<8x128xf32>
    %274 = vector.extract_strided_slice %264 {offsets = [0, 128], sizes = [8, 128], strides = [1, 1]} : vector<8x384xf32> to vector<8x128xf32>
    %275 = arith.addf %273, %274 : vector<8x128xf32>
    %276 = arith.negf %275 : vector<8x128xf32>
    %277 = math.exp %276 : vector<8x128xf32>
    %cst_72 = arith.constant 1.000000e+00 : f32
    %278 = vector.broadcast %cst_72 : f32 to vector<8x128xf32>
    %279 = arith.addf %278, %277 : vector<8x128xf32>
    %280 = arith.divf %278, %279 : vector<8x128xf32>
    %281 = vector.extract_strided_slice %261 {offsets = [0, 256], sizes = [8, 128], strides = [1, 1]} : vector<8x384xf32> to vector<8x128xf32>
    %282 = vector.extract_strided_slice %264 {offsets = [0, 256], sizes = [8, 128], strides = [1, 1]} : vector<8x384xf32> to vector<8x128xf32>
    %283 = arith.mulf %272, %282 : vector<8x128xf32>
    %284 = arith.addf %281, %283 : vector<8x128xf32>
    %285 = math.tanh %284 : vector<8x128xf32>
    %cst_73 = arith.constant 1.000000e+00 : f32
    %286 = vector.broadcast %cst_73 : f32 to vector<8x128xf32>
    %287 = arith.subf %286, %280 : vector<8x128xf32>
    %288 = arith.mulf %287, %285 : vector<8x128xf32>
    %289 = arith.mulf %280, %254 : vector<8x128xf32>
    %290 = arith.addf %288, %289 : vector<8x128xf32>
    %c7_74 = arith.constant 7 : index
    %c0_75 = arith.constant 0 : index
    %c0_76 = arith.constant 0 : index
    %291 = vector.load %arg8[%c7_74, %c0_75, %c0_76] : memref<8x8x128xf32, #tpu.memory_space<vmem>>, vector<1x8x128xf32>
    %292 = vector.shape_cast %291 : vector<1x8x128xf32> to vector<8x128xf32>
    %293 = vector.shape_cast %290 : vector<8x128xf32> to vector<1x8x128xf32>
    tpu.vector_store %arg8[%c7_74, %c0_75, %c0_76], %293 {strides = array<i32>} : memref<8x8x128xf32, #tpu.memory_space<vmem>>, vector<1x8x128xf32>,
    %c0_77 = arith.constant 0 : index
    %c0_78 = arith.constant 0 : index
    %c0_79 = arith.constant 0 : index
    %294 = vector.load %arg9[%c0_77, %c0_78, %c0_79] : memref<8x8x128xf32, #tpu.memory_space<vmem>>, vector<1x8x128xf32>
    %295 = vector.shape_cast %294 : vector<1x8x128xf32> to vector<8x128xf32>
    %296 = vector.shape_cast %290 : vector<8x128xf32> to vector<1x8x128xf32>
    tpu.vector_store %arg9[%c0_77, %c0_78, %c0_79], %296 {strides = array<i32>} : memref<8x8x128xf32, #tpu.memory_space<vmem>>, vector<1x8x128xf32>,
    %297 = tpu.iota {dimensions = array<i32: 2>} : vector<1x1x128xi32>
    %c32_i32 = arith.constant 32 : i32
    %298 = vector.broadcast %c32_i32 : i32 to vector<1x1x128xi32>
    %299 = arith.cmpi slt, %297, %298 : vector<1x1x128xi32>
    %c0_80 = arith.constant 0 : index
    %c0_81 = arith.constant 0 : index
    %c0_82 = arith.constant 0 : index
    %300 = vector.load %arg8[%c0_80, %c0_81, %c0_82] : memref<8x8x128xf32, #tpu.memory_space<vmem>>, vector<8x8x128xf32>
    %c0_83 = arith.constant 0 : index
    %c0_84 = arith.constant 0 : index
    %c0_85 = arith.constant 0 : index
    %301 = vector.load %arg9[%c0_83, %c0_84, %c0_85] : memref<8x8x128xf32, #tpu.memory_space<vmem>>, vector<8x8x128xf32>
    %302 = vector.shape_cast %299 : vector<1x1x128xi1> to vector<1x1x128xi1>
    %303 = vector.broadcast %302 : vector<1x1x128xi1> to vector<8x8x128xi1>
    %304 = arith.select %303, %300, %301 : vector<8x8x128xi1>, vector<8x8x128xf32>
    %305 = vector.shape_cast %304 : vector<8x8x128xf32> to vector<64x128xf32>
    %c0_86 = arith.constant 0 : index
    %c0_87 = arith.constant 0 : index
    %306 = vector.load %arg4[%c0_86, %c0_87] : memref<160x128xf32, #tpu.memory_space<vmem>>, vector<128x128xf32>
    %cst_88 = arith.constant dense<0.000000e+00> : vector<64x128xf32>
    %307 = tpu.matmul %305, %306, %cst_88 {dimension_numbers = #tpu.dot_dimension_numbers<[1], [0], [0], [1], [0, 0, 1, 1], [], []>} : vector<64x128xf32>, vector<128x128xf32>, vector<64x128xf32> -> vector<64x128xf32>
    %c0_89 = arith.constant 0 : index
    %308 = memref.load %arg6[%c0_89] : memref<2xf32, #tpu.memory_space<smem>>
    %309 = vector.broadcast %308 : f32 to vector<64x128xf32>
    %310 = arith.addf %307, %309 : vector<64x128xf32>
    %c0_90 = arith.constant 0 : index
    %c0_91 = arith.constant 0 : index
    %311 = vector.load %arg1[%c0_90, %c0_91] : memref<64x1xf32, #tpu.memory_space<vmem>>, vector<64x1xf32>
    %cst_92 = arith.constant 0.000000e+00 : f32
    %312 = vector.broadcast %cst_92 : f32 to vector<64x1xf32>
    %313 = arith.cmpf oeq, %311, %312 : vector<64x1xf32>
    %cst_93 = arith.constant -1.000000e+30 : f32
    %314 = vector.shape_cast %313 : vector<64x1xi1> to vector<64x1xi1>
    %315 = vector.broadcast %314 : vector<64x1xi1> to vector<64x128xi1>
    %316 = vector.broadcast %cst_93 : f32 to vector<64x128xf32>
    %317 = arith.select %315, %316, %310 : vector<64x128xi1>, vector<64x128xf32>
    %318 = vector.shape_cast %317 : vector<64x128xf32> to vector<8x8x128xf32>
    %cst_94 = arith.constant dense<0xFF800000> : vector<8x128xf32>
    %319 = vector.multi_reduction <maximumf>, %318, %cst_94 [0] : vector<8x8x128xf32> to vector<8x128xf32>
    %320 = vector.shape_cast %319 : vector<8x128xf32> to vector<1x8x128xf32>
    %321 = vector.broadcast %320 : vector<1x8x128xf32> to vector<8x8x128xf32>
    %322 = arith.subf %318, %321 : vector<8x8x128xf32>
    %323 = math.exp %322 : vector<8x8x128xf32>
    %cst_95 = arith.constant dense<0.000000e+00> : vector<8x128xf32>
    %324 = vector.multi_reduction <add>, %323, %cst_95 [0] : vector<8x8x128xf32> to vector<8x128xf32>
    %325 = vector.shape_cast %324 : vector<8x128xf32> to vector<1x8x128xf32>
    %326 = tpu.reciprocal %325 {approx = true} : vector<1x8x128xf32> -> vector<1x8x128xf32>
    %327 = vector.broadcast %326 : vector<1x8x128xf32> to vector<8x8x128xf32>
    %328 = arith.mulf %323, %327 : vector<8x8x128xf32>
    %329 = arith.mulf %328, %304 : vector<8x8x128xf32>
    %cst_96 = arith.constant dense<0.000000e+00> : vector<8x128xf32>
    %330 = vector.multi_reduction <add>, %329, %cst_96 [0] : vector<8x8x128xf32> to vector<8x128xf32>
    %c0_97 = arith.constant 0 : index
    %c0_98 = arith.constant 0 : index
    %331 = vector.load %arg5[%c0_97, %c0_98] : memref<328x32xf32, #tpu.memory_space<vmem>>, vector<128x32xf32>
    %c128 = arith.constant 128 : index
    %c0_99 = arith.constant 0 : index
    %332 = vector.load %arg5[%c128, %c0_99] : memref<328x32xf32, #tpu.memory_space<vmem>>, vector<192x32xf32>
    %c320 = arith.constant 320 : index
    %c0_100 = arith.constant 0 : index
    %333 = vector.load %arg5[%c320, %c0_100] : memref<328x32xf32, #tpu.memory_space<vmem>>, vector<1x32xf32>
    %cst_101 = arith.constant dense<0.000000e+00> : vector<8x32xf32>
    %334 = tpu.matmul %330, %331, %cst_101 {dimension_numbers = #tpu.dot_dimension_numbers<[1], [0], [0], [1], [0, 0, 1, 1], [], []>} : vector<8x128xf32>, vector<128x32xf32>, vector<8x32xf32> -> vector<8x32xf32>
    %c0_102 = arith.constant 0 : index
    %c0_103 = arith.constant 0 : index
    %335 = vector.load %arg2[%c0_102, %c0_103] : memref<8x192xf32, #tpu.memory_space<vmem>>, vector<8x192xf32>
    %cst_104 = arith.constant dense<0.000000e+00> : vector<8x32xf32>
    %336 = tpu.matmul %335, %332, %cst_104 {dimension_numbers = #tpu.dot_dimension_numbers<[1], [0], [0], [1], [0, 0, 1, 1], [], []>} : vector<8x192xf32>, vector<192x32xf32>, vector<8x32xf32> -> vector<8x32xf32>
    %337 = arith.addf %334, %336 : vector<8x32xf32>
    %338 = vector.broadcast %333 : vector<1x32xf32> to vector<8x32xf32>
    %339 = arith.addf %337, %338 : vector<8x32xf32>
    %cst_105 = arith.constant 0.000000e+00 : f32
    %340 = vector.broadcast %cst_105 : f32 to vector<8x32xf32>
    %341 = arith.maximumf %339, %340 : vector<8x32xf32>
    %c128_106 = arith.constant 128 : index
    %c0_107 = arith.constant 0 : index
    %342 = vector.load %arg4[%c128_106, %c0_107] : memref<160x128xf32, #tpu.memory_space<vmem>>, vector<32x128xf32>
    %cst_108 = arith.constant dense<0.000000e+00> : vector<8x128xf32>
    %343 = tpu.matmul %341, %342, %cst_108 {dimension_numbers = #tpu.dot_dimension_numbers<[1], [0], [0], [1], [0, 0, 1, 1], [], []>} : vector<8x32xf32>, vector<32x128xf32>, vector<8x128xf32> -> vector<8x128xf32>
    %c1_109 = arith.constant 1 : index
    %344 = memref.load %arg6[%c1_109] : memref<2xf32, #tpu.memory_space<smem>>
    %345 = vector.broadcast %344 : f32 to vector<8x128xf32>
    %346 = arith.addf %343, %345 : vector<8x128xf32>
    %347 = arith.negf %346 : vector<8x128xf32>
    %348 = math.exp %347 : vector<8x128xf32>
    %cst_110 = arith.constant 1.000000e+00 : f32
    %349 = vector.broadcast %cst_110 : f32 to vector<8x128xf32>
    %350 = arith.addf %349, %348 : vector<8x128xf32>
    %351 = arith.divf %349, %350 : vector<8x128xf32>
    %c0_111 = arith.constant 0 : index
    %c0_112 = arith.constant 0 : index
    %352 = vector.load %arg7[%c0_111, %c0_112] : memref<8x128xf32, #tpu.memory_space<vmem>>, vector<8x128xf32>
    tpu.vector_store %arg7[%c0_111, %c0_112], %351 {strides = array<i32>} : memref<8x128xf32, #tpu.memory_space<vmem>>, vector<8x128xf32>,
    return
  }
}

</mosaic_0001>

<bundles_post_ra>
// kernel: dual_emotion_forward.1
= control target key start
LH: loop header
LB: loop body
LE: loop exit
PB: predicated region body
PF: predicated region fallthrough
CT: control target
= control target key end

     0   :  { %12 = vsyncpa [#allocation5], 0  ;;  %s4695_s0 = inlined_call_operand.vmem [shape: f32[64,64], index: 0, kind: input, shape index: {}]   ;;  %s4696_s1 = inlined_call_operand.vmem [shape: f32[64,1], index: 1, kind: input, shape index: {}]   ;;  %s4697_s2 = inlined_call_operand.vmem [shape: f32[8,192], index: 2, kind: input, shape index: {}]   ;;  %s4698_s3 = inlined_call_operand.vmem [shape: f32[200,384], index: 3, kind: input, shape index: {}]   ;;  %s4699_s4 = inlined_call_operand.vmem [shape: f32[160,128], index: 4, kind: input, shape index: {}]   ;;  %s4700_s5 = inlined_call_operand.vmem [shape: f32[328,32], index: 5, kind: input, shape index: {}]   ;;  %s4701_s6 = inlined_call_operand.vmem [shape: f32[2], index: 6, kind: input, shape index: {}]   ;;  %s4702_s7 = inlined_call_operand.vmem [shape: f32[8,128], index: 7, kind: output, shape index: {}]  }
   0x1   :  { %s31_s26 = sshll.u32 %s4701_s6, 4  ;;  %s32_s26 = int_to_ptr.vmem [resolvable:$true] %s31_s26 }
   0x2   :  { %s3656_s27 = scalar_lea.vmem %s32_s26, 16  ;;  %p3661_p1 = scmp.lt.s32.totalorder %s32_s26, %s32_s26 }
   0x3   :  { %p3657_p0 = scmp.ne.s32.totalorder %s32_s26, %s3656_s27  ;;  %p3662_p2 = scmp.lt.s32.totalorder %s3656_s27, %s3656_s27 }
   0x5   :  { %p3663_p3 = por %p3662_p2, %p3661_p1 }
   0x7   :  { %p3664_p4 = pnand %p3663_p3, %p3657_p0 }
   0x9   :  { %3667 = shalt.err (!%p3664_p4)
}
   0xa   :  { %s3670_s28 = smov [#allocation4]  }
   0xb   :  { %34 = dma.vmem_to_smem %s32_s26, 16, %s3670_s28, [#allocation5]  }
   0xc   :  { %3668 = dma.done.wait [#allocation5], 16  }
   0xd   :  { %3669 = vsyncadd [#allocation5], 4294967280 }
   0xe   :  { %38 = sfence }
   0xf   :  { %v40_v0 = vld [vmem:[%s4698_s3 + $0x8] sm:$0xff]  ;;  %v43_v1 = vld [vmem:[%s4698_s3 + $0x20] sm:$0xff]  ;;  %v42_v4 = vld [vmem:[%s4698_s3 + $0x18] sm:$0xff]  ;;  %v3671_v7 = vmov 0.0   ;;  %vm139_vm0 = vcmask 523264   ;;  %vm3673_vm1 = vmmov 0  }
  0x10   :  { %v39_v2 = vld [vmem:[%s4698_s3] sm:$0xff]  ;;  %v2921_v3 = vpack.c.bf16 %v43_v1, %v40_v0  ;;  %v46_v5 = vld [vmem:[%s4698_s3 + $0x38] sm:$0xff]  ;;  %v49_v6 = vld [vmem:[%s4698_s3 + $0x50] sm:$0xff]  ;;  %228 = vmatprep.mubr.f32.mxu0 %v3671_v7  ;;  %s1769_s22 = sld [smem:[#allocation4]]  ;;  %s2322_s8 = sld [smem:[#allocation4 + $0x1]] }
  0x11   :  { %v2923_v8 = vpack.c.bf16 %v42_v4, %v39_v2  ;;  %v2925_v9 = vpack.c.bf16 %v49_v6, %v46_v5  ;;  %v45_v10 = vld [vmem:[%s4698_s3 + $0x30] sm:$0xff]  ;;  %v48_v11 = vld [vmem:[%s4698_s3 + $0x48] sm:$0xff]  ;;  %v55_v13 = vld [vmem:[%s4698_s3 + $0x80] sm:$0xff]  ;;  %v3672_v4 = vmov 0.0|0.0  }
  0x12   :  { %v52_v12 = vld [vmem:[%s4698_s3 + $0x68] sm:$0xff]  ;;  %2922 = vmatprep.subr.bf16.mxu0 %v2921_v3  ;;  %v2927_v14 = vpack.c.bf16 %v48_v11, %v45_v10  ;;  %v51_v16 = vld [vmem:[%s4698_s3 + $0x60] sm:$0xff]  ;;  %v54_v17 = vld [vmem:[%s4698_s3 + $0x78] sm:$0xff] }
  0x13   :  { %2924 = vmatpush1.bf16.msra.mxu0 %v2923_v8  ;;  %v2929_v15 = vpack.c.bf16 %v55_v13, %v52_v12  ;;  %v115_v18 = vld [vmem:[%s4695_s0] sm:$0xff]  ;;  %v58_v19 = vld [vmem:[%s4698_s3 + $0x98] sm:$0xff]  ;;  %v61_v20 = vld [vmem:[%s4698_s3 + $0xb0] sm:$0xff]  ;;  %v2931_v21 = vpack.c.bf16 %v54_v17, %v51_v16 }
  0x14   :  { %2926 = vmatprep.subr.bf16.mxu0 %v2925_v9  ;;  %2539 = vmatprep.mubr.msk.f32.mxu1 %vm139_vm0, %v115_v18  ;;  %v2933_v22 = vpack.c.bf16 %v61_v20, %v58_v19  ;;  %v57_v23 = vld [vmem:[%s4698_s3 + $0x90] sm:$0xff]  ;;  %v60_v24 = vld [vmem:[%s4698_s3 + $0xa8] sm:$0xff]  ;;  %v67_v26 = vld [vmem:[%s4698_s3 + $0xe0] sm:$0xff] }
  0x15   :  { %v64_v25 = vld [vmem:[%s4698_s3 + $0xc8] sm:$0xff]  ;;  %v41_v27 = vld [vmem:[%s4698_s3 + $0x10] sm:$0xff]  ;;  %v2935_v30 = vpack.c.bf16 %v60_v24, %v57_v23  ;;  %v47_v31 = vld [vmem:[%s4698_s3 + $0x40] sm:$0xff] }
  0x16   :  { %v44_v28 = vld [vmem:[%s4698_s3 + $0x28] sm:$0xff]  ;;  %v3786_v32 = vpack.c.bf16 %v67_v26, %v64_v25  ;;  %v63_v33 = vld [vmem:[%s4698_s3 + $0xc0] sm:$0xff]  ;;  %v66_v34 = vld [vmem:[%s4698_s3 + $0xd8] sm:$0xff] }
  0x17   :  { %2928 = vmatpush1.bf16.msra.mxu0 %v2927_v14  ;;  %v2937_v29 = vpack.c.bf16 %v44_v28, %v41_v27  ;;  %v50_v35 = vld [vmem:[%s4698_s3 + $0x58] sm:$0xff]  ;;  %v73_v37 = vld [vmem:[%s4698_s3 + $0x110] sm:$0xff]  ;;  %v56_v40 = vld [vmem:[%s4698_s3 + $0x88] sm:$0xff]  ;;  %v3809_v41 = vpack.c.bf16 %v66_v34, %v63_v33 }
  0x18   :  { %2930 = vmatprep.subr.bf16.mxu0 %v2929_v15  ;;  %v70_v36 = vld [vmem:[%s4698_s3 + $0xf8] sm:$0xff]  ;;  %v2941_v38 = vpack.c.bf16 %v50_v35, %v47_v31  ;;  %v53_v39 = vld [vmem:[%s4698_s3 + $0x70] sm:$0xff]  ;;  %v72_v45 = vld [vmem:[%s4698_s3 + $0x108] sm:$0xff] }
  0x19   :  { %2938 = vmatprep.subr.bf16.mxu1 %v2937_v29  ;;  %v69_v42 = vld [vmem:[%s4698_s3 + $0xf0] sm:$0xff]  ;;  %v2945_v43 = vpack.c.bf16 %v56_v40, %v53_v39  ;;  %v3815_v44 = vpack.c.bf16 %v73_v37, %v70_v36  ;;  %v59_v46 = vld [vmem:[%s4698_s3 + $0xa0] sm:$0xff]  ;;  %v62_v47 = vld [vmem:[%s4698_s3 + $0xb8] sm:$0xff] }
  0x1a   :  { %2940 = vmatpush3.bf16.msra.mxu1 %v2937_v29  ;;  %v76_v48 = vld [vmem:[%s4698_s3 + $0x128] sm:$0xff]  ;;  %v79_v49 = vld [vmem:[%s4698_s3 + $0x140] sm:$0xff]  ;;  %v2949_v50 = vpack.c.bf16 %v62_v47, %v59_v46  ;;  %v3838_v52 = vpack.c.bf16 %v72_v45, %v69_v42  ;;  %v78_v55 = vld [vmem:[%s4698_s3 + $0x138] sm:$0xff] }
  0x1b   :  { %2932 = vmatpush1.bf16.msra.mxu0 %v2931_v21  ;;  %2942 = vmatprep.subr.bf16.mxu1 %v2941_v38  ;;  %v116_v51 = vld [vmem:[%s4695_s0 + $0x8] sm:$0xff]  ;;  %v3841_v53 = vpack.c.bf16 %v79_v49, %v76_v48  ;;  %v75_v54 = vld [vmem:[%s4698_s3 + $0x120] sm:$0xff]  ;;  %v82_v56 = vld [vmem:[%s4698_s3 + $0x158] sm:$0xff] }
  0x1c   :  { %2934 = vmatprep.subr.bf16.mxu0 %v2933_v22  ;;  %v85_v57 = vld [vmem:[%s4698_s3 + $0x170] sm:$0xff]  ;;  %v68_v59 = vld [vmem:[%s4698_s3 + $0xe8] sm:$0xff]  ;;  %v3867_v61 = vpack.c.bf16 %v78_v55, %v75_v54  ;;  %v91_v2 = vld [vmem:[%s4698_s3 + $0x1a0] sm:$0xff] }
  0x1d   :  { %v65_v58 = vld [vmem:[%s4698_s3 + $0xd0] sm:$0xff]  ;;  %v3870_v62 = vpack.c.bf16 %v85_v57, %v82_v56  ;;  %v84_v0 = vld [vmem:[%s4698_s3 + $0x168] sm:$0xff]  ;;  %v71_v5 = vld [vmem:[%s4698_s3 + $0x100] sm:$0xff] }
  0x1e   :  { %2944 = vmatpush3.bf16.msra.mxu1 %v2941_v38  ;;  %v117_v60 = vld [vmem:[%s4695_s0 + $0x10] sm:$0xff]  ;;  %v88_v1 = vld [vmem:[%s4698_s3 + $0x188] sm:$0xff]  ;;  %v3884_v3 = vpack.c.bf16 %v68_v59, %v65_v58  ;;  %v74_v6 = vld [vmem:[%s4698_s3 + $0x118] sm:$0xff] }
  0x1f   :  { %2936 = vmatpush1.bf16.msra.mxu0 %v2935_v30  ;;  %2946 = vmatprep.subr.bf16.mxu1 %v2945_v43  ;;  %v81_v63 = vld [vmem:[%s4698_s3 + $0x150] sm:$0xff]  ;;  %v118_v8 = vld [vmem:[%s4695_s0 + $0x18] sm:$0xff]  ;;  %v3902_v10 = vpack.c.bf16 %v91_v2, %v88_v1  ;;  %v87_v11 = vld [vmem:[%s4698_s3 + $0x180] sm:$0xff]  ;;  %v3918_v15 = vpack.c.bf16 %v74_v6, %v71_v5 }
  0x20   :  { %2954 = vmatprep.subr.bf16.mxu0 %v3786_v32  ;;  %v3899_v9 = vpack.c.bf16 %v84_v0, %v81_v63  ;;  %v90_v12 = vld [vmem:[%s4698_s3 + $0x198] sm:$0xff]  ;;  %v97_v14 = vld [vmem:[%s4698_s3 + $0x1d0] sm:$0xff]  ;;  %v80_v17 = vld [vmem:[%s4698_s3 + $0x148] sm:$0xff] }
  0x21   :  { %v94_v13 = vld [vmem:[%s4698_s3 + $0x1b8] sm:$0xff]  ;;  %v77_v16 = vld [vmem:[%s4698_s3 + $0x130] sm:$0xff]  ;;  %v3934_v19 = vpack.c.bf16 %v90_v12, %v87_v11  ;;  %v96_v22 = vld [vmem:[%s4698_s3 + $0x1c8] sm:$0xff] }
  0x22   :  { %2288 = vmatmul.mubr.msk.f32.vlgmr.msra.gmra.mrb[0].mxu0 %vm139_vm0, %v115_v18  ;;  %2948 = vmatpush3.bf16.msra.mxu1 %v2945_v43  ;;  %v119_v18 = vld [vmem:[%s4695_s0 + $0x20] sm:$0xff]  ;;  %v3937_v20 = vpack.c.bf16 %v97_v14, %v94_v13  ;;  %v93_v21 = vld [vmem:[%s4698_s3 + $0x1b0] sm:$0xff]  ;;  %v100_v23 = vld [vmem:[%s4698_s3 + $0x1e8] sm:$0xff]  ;;  %v3953_v25 = vpack.c.bf16 %v80_v17, %v77_v16 }
  0x23   :  { %2956 = vmatpush1.bf16.msra.mxu0 %v3809_v41  ;;  %234 = vmatprep.mubr.f32.mxu0 %v3671_v7  ;;  %v103_v24 = vld [vmem:[%s4698_s3 + $0x200] sm:$0xff]  ;;  %v86_v27 = vld [vmem:[%s4698_s3 + $0x178] sm:$0xff]  ;;  %v120_v28 = vld [vmem:[%s4695_s0 + $0x28] sm:$0xff]  ;;  %v3969_v29 = vpack.c.bf16 %v96_v22, %v93_v21 }
  0x24   :  { %2958 = vmatprep.subr.bf16.mxu0 %v3815_v44  ;;  %2950 = vmatprep.subr.bf16.mxu1 %v2949_v50  ;;  %v83_v26 = vld [vmem:[%s4698_s3 + $0x160] sm:$0xff]  ;;  %v121_v30 = vld [vmem:[%s4695_s0 + $0x30] sm:$0xff]  ;;  %v3975_v31 = vpack.c.bf16 %v103_v24, %v100_v23  ;;  %v102_v34 = vld [vmem:[%s4698_s3 + $0x1f8] sm:$0xff] }
  0x25   :  { %v99_v33 = vld [vmem:[%s4698_s3 + $0x1e0] sm:$0xff]  ;;  %v106_v35 = vld [vmem:[%s4698_s3 + $0x218] sm:$0xff]  ;;  %v109_v36 = vld [vmem:[%s4698_s3 + $0x230] sm:$0xff]  ;;  %v3991_v37 = vpack.c.bf16 %v86_v27, %v83_v26 }
  0x26   :  { %2289 = vmatmul.mubr.msk.f32.gmra.mrb[2].mxu0 %vm139_vm0, %v116_v51  ;;  %2952 = vmatpush3.bf16.msra.mxu1 %v2949_v50  ;;  %v89_v38 = vld [vmem:[%s4698_s3 + $0x190] sm:$0xff]  ;;  %v92_v39 = vld [vmem:[%s4698_s3 + $0x1a8] sm:$0xff]  ;;  %v4004_v40 = vpack.c.bf16 %v102_v34, %v99_v33  ;;  %v122_v42 = vld [vmem:[%s4695_s0 + $0x38] sm:$0xff]  ;;  %v4010_v43 = vpack.c.bf16 %v109_v36, %v106_v35 }
  0x27   :  { %2960 = vmatpush1.bf16.msra.mxu0 %v3838_v52  ;;  %240 = vmatprep.mubr.f32.mxu0 %v3671_v7  ;;  %v105_v45 = vld [vmem:[%s4698_s3 + $0x210] sm:$0xff]  ;;  %v108_v46 = vld [vmem:[%s4698_s3 + $0x228] sm:$0xff]  ;;  %v4020_v47 = vpack.c.bf16 %v92_v39, %v89_v38  ;;  %v95_v48 = vld [vmem:[%s4698_s3 + $0x1c0] sm:$0xff] }
  0x28   :  { %2962 = vmatprep.subr.bf16.mxu0 %v3841_v53  ;;  %2985 = vmatprep.subr.bf16.mxu1 %v3672_v4  ;;  %v98_v49 = vld [vmem:[%s4698_s3 + $0x1d8] sm:$0xff]  ;;  %v4034_v50 = vpack.c.bf16 %v108_v46, %v105_v45  ;;  %v101_v54 = vld [vmem:[%s4698_s3 + $0x1f0] sm:$0xff]  ;;  %v104_v55 = vld [vmem:[%s4698_s3 + $0x208] sm:$0xff] }
  0x29   :  { %2540 = vmatmul.mubr.msk.f32.vlgmr.msra.gmra.mrb[0].mxu1 %vm139_vm0, %v116_v51  ;;  %v4038_v51 = vpack.c.bf16 %v98_v49, %v95_v48  ;;  %v4052_v56 = vpack.c.bf16 %v104_v55, %v101_v54  ;;  %v107_v57 = vld [vmem:[%s4698_s3 + $0x220] sm:$0xff]  ;;  %v110_v58 = vld [vmem:[%s4698_s3 + $0x238] sm:$0xff] }
  0x2a   :  { %2290 = vmatmul.mubr.msk.f32.gmra.mrb[4].mxu0 %vm139_vm0, %v117_v60  ;;  %2987 = vmatpush3.bf16.msra.mxu1 %v3884_v3  ;;  %v4066_v59 = vpack.c.bf16 %v110_v58, %v107_v57  ;;  %v2286_v1 = vld [vmem:[%s4698_s3 + $0x240] ss:$8 sm:$0x7]  ;;  %v2287_v23 = vld [vmem:[%s4698_s3 + $0x241] ss:$8 sm:$0x7] }
  0x2b   :  { %2964 = vmatpush1.bf16.msra.mxu0 %v3867_v61  ;;  %246 = vmatprep.mubr.f32.mxu0 %v3671_v7 }
  0x2c   :  { %2966 = vmatprep.subr.bf16.mxu0 %v3870_v62  ;;  %2542 = vmatprep.mubr.msk.f32.mxu1 %vm139_vm0, %v117_v60  ;;  %v124_v60 = vlaneseq }
  0x2d   :  { %2988 = vmatprep.subr.bf16.mxu1 %v3672_v4  ;;  %2543 = vmatmul.mubr.msk.f32.gmra.mrb[2].mxu1 %vm139_vm0, %v118_v8 }
  0x2e   :  { %2291 = vmatmul.mubr.msk.f32.gmra.mrb[6].mxu0 %vm139_vm0, %v118_v8  ;;  %2990 = vmatpush3.bf16.msra.mxu1 %v3918_v15  ;;  %v125_v63 = vshrl.u32 %v124_v60, 7 }
  0x2f   :  { %2968 = vmatpush1.bf16.msra.mxu0 %v3899_v9  ;;  %252 = vmatprep.mubr.f32.mxu0 %v3671_v7 }
  0x30   :  { %2970 = vmatprep.subr.bf16.mxu0 %v3902_v10  ;;  %2545 = vmatprep.mubr.msk.f32.mxu1 %vm139_vm0, %v119_v18  ;;  %v134_v0 = vsub.s32 2, %v125_v63  ;;  %v126_v22 = vsub.s32 0, %v125_v63 }
  0x31   :  { %2991 = vmatprep.subr.bf16.mxu1 %v3672_v4  ;;  %2546 = vmatmul.mubr.msk.f32.gmra.mrb[4].mxu1 %vm139_vm0, %v120_v28 }
  0x32   :  { %2292 = vmatmul.mubr.msk.f32.gmra.mrb[8].mxu0 %vm139_vm0, %v119_v18  ;;  %2993 = vmatpush3.bf16.msra.mxu1 %v3953_v25  ;;  %v135_v2 = vrot.slane %v2286_v1, %v134_v0  ;;  %v127_v33 = vrot.slane %v2286_v1, %v126_v22  ;;  %v386_v34 = vrot.slane %v2287_v23, %v126_v22 }
  0x33   :  { %2972 = vmatpush1.bf16.msra.mxu0 %v3934_v19  ;;  %258 = vmatprep.mubr.f32.mxu0 %v3671_v7 }
  0x34   :  { %2974 = vmatprep.subr.bf16.mxu0 %v3937_v20  ;;  %2548 = vmatprep.mubr.msk.f32.mxu1 %vm139_vm0, %v121_v30  ;;  %v4125_v38 = vadd.f32 %v386_v34, %v127_v33 }
  0x35   :  { %2994 = vmatprep.subr.bf16.mxu1 %v3672_v4  ;;  %2549 = vmatmul.mubr.msk.f32.gmra.mrb[6].mxu1 %vm139_vm0, %v122_v42 }
  0x36   :  { %2293 = vmatmul.mubr.msk.f32.gmra.mrb[10].mxu0 %vm139_vm0, %v120_v28  ;;  %2996 = vmatpush3.bf16.msra.mxu1 %v3991_v37  ;;  %v130_v28 = vsub.s32 1, %v125_v63 }
  0x37   :  { %2976 = vmatpush1.bf16.msra.mxu0 %v3969_v29  ;;  %264 = vmatprep.mubr.f32.mxu0 %v3671_v7 }
  0x38   :  { %2978 = vmatprep.subr.bf16.mxu0 %v3975_v31  ;;  %2583 = vmatprep.mubr.msk.f32.mxu1 %vm3673_vm1, %v3671_v7  ;;  %v131_v35 = vrot.slane %v2286_v1, %v130_v28  ;;  %v390_v36 = vrot.slane %v2287_v23, %v130_v28  ;;  %v4131_v1 = vrot.slane %v2287_v23, %v134_v0 }
  0x39   :  { %2997 = vmatprep.subr.bf16.mxu1 %v3672_v4 }
  0x3a   :  { %2294 = vmatmul.mubr.msk.f32.gmra.mrb[12].mxu0 %vm139_vm0, %v121_v30  ;;  %2999 = vmatpush3.bf16.msra.mxu1 %v4020_v47 }
  0x3b   :  { %2980 = vmatpush1.bf16.msra.mxu0 %v4004_v40  ;;  %270 = vmatprep.mubr.f32.mxu0 %v3671_v7 }
  0x3c   :  { %2982 = vmatprep.subr.bf16.mxu0 %v4010_v43  ;;  %3000 = vmatprep.subr.bf16.mxu1 %v3672_v4 }
  0x3e   :  { %2295 = vmatmul.mubr.msk.f32.gmra.mrb[14].mxu0 %vm139_vm0, %v122_v42  ;;  %3002 = vmatpush3.bf16.msra.mxu1 %v4038_v51  ;;  %v4127_v42 = vadd.f32 %v390_v36, %v131_v35 }
  0x3f   :  { %2984 = vmatpush1.bf16.msra.mxu0 %v4034_v50  ;;  %462 = vmatprep.mubr.f32.mxu0 %v3671_v7 }
  0x40   :  { %3010 = vmatprep.subr.bf16.mxu0 %v3786_v32  ;;  %3003 = vmatprep.subr.bf16.mxu1 %v3672_v4 }
  0x42   :  { %463 = vmatmul.mubr.f32.vlgmr.msra.gmra.mrb[0].mxu0 %v3671_v7  ;;  %3005 = vmatpush3.bf16.msra.mxu1 %v4052_v56 }
  0x43   :  { %3012 = vmatpush1.bf16.msra.mxu0 %v3809_v41  ;;  %627 = vmatprep.mubr.f32.mxu0 %v3671_v7 }
  0x44   :  { %3014 = vmatprep.subr.bf16.mxu0 %v3815_v44  ;;  %3006 = vmatprep.subr.bf16.mxu1 %v3672_v4 }
  0x46   :  { %3008 = vmatpush3.bf16.msra.mxu1 %v4066_v59 }
  0x47   :  { %3016 = vmatpush1.bf16.msra.mxu0 %v3838_v52  ;;  %3041 = vmatprep.subr.bf16.mxu1 %v3672_v4 }
  0x48   :  { %3018 = vmatprep.subr.bf16.mxu0 %v3841_v53 }
  0x49   :  { %2584 = vmatmul.mubr.f32.vlgmr.msra.gmra.mrb[8].mxu1 %v3671_v7 }
  0x4a   :  { %3043 = vmatpush3.bf16.msra.mxu1 %v3884_v3  ;;  %2618 = vmatprep.mubr.msk.f32.mxu1 %vm3673_vm1, %v3671_v7 }
  0x4b   :  { %3020 = vmatpush1.bf16.msra.mxu0 %v3867_v61  ;;  %3044 = vmatprep.subr.bf16.mxu1 %v3672_v4 }
  0x4c   :  { %3022 = vmatprep.subr.bf16.mxu0 %v3870_v62 }
  0x4e   :  { %3046 = vmatpush3.bf16.msra.mxu1 %v3918_v15 }
  0x4f   :  { %3024 = vmatpush1.bf16.msra.mxu0 %v3899_v9  ;;  %3047 = vmatprep.subr.bf16.mxu1 %v3672_v4 }
  0x50   :  { %3026 = vmatprep.subr.bf16.mxu0 %v3902_v10 }
  0x52   :  { %3049 = vmatpush3.bf16.msra.mxu1 %v3953_v25 }
  0x53   :  { %3028 = vmatpush1.bf16.msra.mxu0 %v3934_v19  ;;  %3050 = vmatprep.subr.bf16.mxu1 %v3672_v4 }
  0x54   :  { %3030 = vmatprep.subr.bf16.mxu0 %v3937_v20 }
  0x56   :  { %3052 = vmatpush3.bf16.msra.mxu1 %v3991_v37 }
  0x57   :  { %3032 = vmatpush1.bf16.msra.mxu0 %v3969_v29  ;;  %3053 = vmatprep.subr.bf16.mxu1 %v3672_v4 }
  0x58   :  { %3034 = vmatprep.subr.bf16.mxu0 %v3975_v31 }
  0x5a   :  { %3055 = vmatpush3.bf16.msra.mxu1 %v4020_v47 }
  0x5b   :  { %3036 = vmatpush1.bf16.msra.mxu0 %v4004_v40  ;;  %3056 = vmatprep.subr.bf16.mxu1 %v3672_v4 }
  0x5c   :  { %3038 = vmatprep.subr.bf16.mxu0 %v4010_v43 }
  0x5e   :  { %3058 = vmatpush3.bf16.msra.mxu1 %v4038_v51 }
  0x5f   :  { %3040 = vmatpush1.bf16.msra.mxu0 %v4034_v50  ;;  %3059 = vmatprep.subr.bf16.mxu1 %v3672_v4 }
  0x60   :  { %3066 = vmatprep.subr.bf16.mxu0 %v3786_v32 }
  0x62   :  { %3061 = vmatpush3.bf16.msra.mxu1 %v4052_v56 }
  0x63   :  { %3062 = vmatprep.subr.bf16.mxu1 %v3672_v4 }
  0x66   :  { %3064 = vmatpush3.bf16.msra.mxu1 %v4066_v59 }
  0x67   :  { %3097 = vmatprep.subr.bf16.mxu1 %v3672_v4 }
  0xfc   :  { %v2541_v5 = vpop.f32.mrb[0].mxu1 }
  0xfd   :  { %v4108_v6 = vadd.f32 %v2541_v5, %v135_v2  ;;  %v343_v8 = vpop.f32.mrb[1].mxu1 }
 0x100   :  { %v2544_v11 = vpop.f32.mrb[2].mxu1 }
 0x101   :  { %v4110_v12 = vadd.f32 %v2544_v11, %v135_v2  ;;  %v353_v13 = vpop.f32.mrb[3].mxu1 }
 0x102   :  { %v4112_v14 = vadd.f32 %v353_v13, %v135_v2 }
 0x104   :  { %v2547_v16 = vpop.f32.mrb[4].mxu1 }
 0x105   :  { %v4114_v17 = vadd.f32 %v2547_v16, %v135_v2  ;;  %v363_v18 = vpop.f32.mrb[5].mxu1 }
 0x106   :  { %v4116_v21 = vadd.f32 %v363_v18, %v135_v2  ;;  %v344_v18 = vadd.f32 %v343_v8, %v135_v2 }
 0x108   :  { %v2550_v24 = vpop.f32.mrb[6].mxu1 }
 0x109   :  { %v4121_v26 = vadd.f32 %v2550_v24, %v135_v2  ;;  %v373_v27 = vpop.f32.mrb[7].mxu1 }
 0x10a   :  { %v4123_v30 = vadd.f32 %v373_v27, %v135_v2 }
 0x115   :  { %v464_v39 = vpop.f32.mrb[0].mxu0 }
 0x116   :  { %v3500_v45 = vadd.f32 %v4125_v38, %v464_v39  ;;  %v466_v46 = vpop.f32.mrb[1].mxu0 }
 0x117   :  { %v3502_v49 = vadd.f32 %v4127_v42, %v466_v46 }
 0x118   :  { %v2304_v48 = vmul.f32 -1.442695, %v3500_v45 }
 0x119   :  { %v2305_v54 = vmul.f32 -1.442695, %v3502_v49 }
 0x11a   :  { %3554 = vpow2.f32 %v2304_v48 }
 0x11b   :  { %3556 = vpow2.f32 %v2305_v54 }
 0x11c   :  { %v535_v55 = vpop.f32.mrb[8].mxu1 }
 0x11d   :  { %v2585_v57 = vpop.f32.mrb[9].mxu1  ;;  %v536_v13 = vadd.f32 %v535_v55, %v4131_v1 }
 0x124   :  { %v3555_v58 = vpop.eup %3554 }
 0x125   :  { %v543_v63 = vadd.f32 1.0, %v3555_v58  ;;  %v3557_v5 = vpop.eup %3556 }
 0x126   :  { %v550_v11 = vadd.f32 1.0, %v3557_v5 }
 0x127   :  { %3558 = vrcp.f32 %v543_v63 }
 0x128   :  { %3560 = vrcp.f32 %v550_v11 }
 0x131   :  { %v3559_v16 = vpop.eup %3558 }
 0x132   :  { %v553_v22 = vmul.f32 %v3559_v16, %v536_v13  ;;  %v3561_v27 = vpop.eup %3560 }
 0x133   :  { %v556_v28 = vsub.f32 1.0, %v3561_v27  ;;  %v558_v35 = vmul.f32 0.0, %v3561_v27 }
 0x134   :  { %v554_v24 = vadd.f32 %v553_v22, %v344_v18 }
 0x136   :  { %3562 = vtanh.f32 %v554_v24 }
 0x140   :  { %v3563_v33 = vpop.eup %3562 }
 0x141   :  { %v557_v34 = vmul.f32 %v3563_v33, %v556_v28 }
 0x143   :  { %v4134_v36 = vadd.f32 %v558_v35, %v557_v34 }
 0x145   :  { %628 = vmatmul.mubr.f32.vlgmr.msra.gmra.mrb[2].mxu0 %v4134_v36  ;;  %2619 = vmatmul.mubr.f32.vlgmr.msra.gmra.mrb[10].mxu1 %v4134_v36 }
 0x146   :  { %3068 = vmatpush1.bf16.msra.mxu0 %v3809_v41  ;;  %3099 = vmatpush3.bf16.msra.mxu1 %v3884_v3 }
 0x147   :  { %3070 = vmatprep.subr.bf16.mxu0 %v3815_v44  ;;  %3100 = vmatprep.subr.bf16.mxu1 %v3672_v4 }
 0x148   :  { %793 = vmatprep.mubr.f32.mxu0 %v3671_v7  ;;  %2653 = vmatprep.mubr.msk.f32.mxu1 %vm3673_vm1, %v3671_v7 }
 0x14a   :  { %3072 = vmatpush1.bf16.msra.mxu0 %v3838_v52  ;;  %3102 = vmatpush3.bf16.msra.mxu1 %v3918_v15 }
 0x14b   :  { %3074 = vmatprep.subr.bf16.mxu0 %v3841_v53  ;;  %3103 = vmatprep.subr.bf16.mxu1 %v3672_v4 }
 0x14e   :  { %3076 = vmatpush1.bf16.msra.mxu0 %v3867_v61  ;;  %3105 = vmatpush3.bf16.msra.mxu1 %v3953_v25 }
 0x14f   :  { %3078 = vmatprep.subr.bf16.mxu0 %v3870_v62  ;;  %3106 = vmatprep.subr.bf16.mxu1 %v3672_v4 }
 0x152   :  { %3080 = vmatpush1.bf16.msra.mxu0 %v3899_v9  ;;  %3108 = vmatpush3.bf16.msra.mxu1 %v3991_v37 }
 0x153   :  { %3082 = vmatprep.subr.bf16.mxu0 %v3902_v10  ;;  %3109 = vmatprep.subr.bf16.mxu1 %v3672_v4 }
 0x156   :  { %3084 = vmatpush1.bf16.msra.mxu0 %v3934_v19  ;;  %3111 = vmatpush3.bf16.msra.mxu1 %v4020_v47 }
 0x157   :  { %3086 = vmatprep.subr.bf16.mxu0 %v3937_v20  ;;  %3112 = vmatprep.subr.bf16.mxu1 %v3672_v4 }
 0x15a   :  { %3088 = vmatpush1.bf16.msra.mxu0 %v3969_v29  ;;  %3114 = vmatpush3.bf16.msra.mxu1 %v4038_v51 }
 0x15b   :  { %3090 = vmatprep.subr.bf16.mxu0 %v3975_v31  ;;  %3115 = vmatprep.subr.bf16.mxu1 %v3672_v4 }
 0x15e   :  { %3092 = vmatpush1.bf16.msra.mxu0 %v4004_v40  ;;  %3117 = vmatpush3.bf16.msra.mxu1 %v4052_v56 }
 0x15f   :  { %3094 = vmatprep.subr.bf16.mxu0 %v4010_v43  ;;  %3118 = vmatprep.subr.bf16.mxu1 %v3672_v4 }
 0x162   :  { %3096 = vmatpush1.bf16.msra.mxu0 %v4034_v50  ;;  %3120 = vmatpush3.bf16.msra.mxu1 %v4066_v59 }
 0x163   :  { %3122 = vmatprep.subr.bf16.mxu0 %v3786_v32  ;;  %3153 = vmatprep.subr.bf16.mxu1 %v3672_v4 }
 0x218   :  { %v629_v0 = vpop.f32.mrb[2].mxu0  ;;  %v700_v2 = vpop.f32.mrb[10].mxu1 }
 0x219   :  { %v3504_v8 = vadd.f32 %v4125_v38, %v629_v0  ;;  %v631_v23 = vpop.f32.mrb[3].mxu0  ;;  %v2620_v39 = vpop.f32.mrb[11].mxu1  ;;  %v701_v58 = vadd.f32 %v700_v2, %v4131_v1 }
 0x21a   :  { %v3506_v46 = vadd.f32 %v4127_v42, %v631_v23 }
 0x21b   :  { %v2306_v45 = vmul.f32 -1.442695, %v3504_v8 }
 0x21c   :  { %v2307_v48 = vmul.f32 -1.442695, %v3506_v46 }
 0x21d   :  { %3564 = vpow2.f32 %v2306_v45 }
 0x21e   :  { %3566 = vpow2.f32 %v2307_v48 }
 0x227   :  { %v3565_v49 = vpop.eup %3564 }
 0x228   :  { %v708_v54 = vadd.f32 1.0, %v3565_v49  ;;  %v3567_v55 = vpop.eup %3566 }
 0x229   :  { %v715_v57 = vadd.f32 1.0, %v3567_v55 }
 0x22a   :  { %3568 = vrcp.f32 %v708_v54 }
 0x22b   :  { %3570 = vrcp.f32 %v715_v57 }
 0x234   :  { %v3569_v63 = vpop.eup %3568 }
 0x235   :  { %v718_v5 = vmul.f32 %v3569_v63, %v701_v58  ;;  %v3571_v13 = vpop.eup %3570 }
 0x236   :  { %v721_v16 = vsub.f32 1.0, %v3571_v13  ;;  %v723_v24 = vmul.f32 %v3571_v13, %v4134_v36 }
 0x237   :  { %v719_v11 = vadd.f32 %v718_v5, %v4108_v6 }
 0x239   :  { %3572 = vtanh.f32 %v719_v11 }
 0x243   :  { %v3573_v18 = vpop.eup %3572 }
 0x244   :  { %v722_v22 = vmul.f32 %v3573_v18, %v721_v16 }
 0x246   :  { %v4178_v27 = vadd.f32 %v723_v24, %v722_v22 }
 0x248   :  { %794 = vmatmul.mubr.f32.vlgmr.msra.gmra.mrb[4].mxu0 %v4178_v27  ;;  %2654 = vmatmul.mubr.f32.vlgmr.msra.gmra.mrb[12].mxu1 %v4178_v27 }
 0x249   :  { %3124 = vmatpush1.bf16.msra.mxu0 %v3809_v41  ;;  %3155 = vmatpush3.bf16.msra.mxu1 %v3884_v3 }
 0x24a   :  { %3126 = vmatprep.subr.bf16.mxu0 %v3815_v44  ;;  %3156 = vmatprep.subr.bf16.mxu1 %v3672_v4 }
 0x24b   :  { %959 = vmatprep.mubr.f32.mxu0 %v3671_v7  ;;  %2688 = vmatprep.mubr.msk.f32.mxu1 %vm3673_vm1, %v3671_v7 }
 0x24d   :  { %3128 = vmatpush1.bf16.msra.mxu0 %v3838_v52  ;;  %3158 = vmatpush3.bf16.msra.mxu1 %v3918_v15 }
 0x24e   :  { %3130 = vmatprep.subr.bf16.mxu0 %v3841_v53  ;;  %3159 = vmatprep.subr.bf16.mxu1 %v3672_v4 }
 0x251   :  { %3132 = vmatpush1.bf16.msra.mxu0 %v3867_v61  ;;  %3161 = vmatpush3.bf16.msra.mxu1 %v3953_v25 }
 0x252   :  { %3134 = vmatprep.subr.bf16.mxu0 %v3870_v62  ;;  %3162 = vmatprep.subr.bf16.mxu1 %v3672_v4 }
 0x255   :  { %3136 = vmatpush1.bf16.msra.mxu0 %v3899_v9  ;;  %3164 = vmatpush3.bf16.msra.mxu1 %v3991_v37 }
 0x256   :  { %3138 = vmatprep.subr.bf16.mxu0 %v3902_v10  ;;  %3165 = vmatprep.subr.bf16.mxu1 %v3672_v4 }
 0x259   :  { %3140 = vmatpush1.bf16.msra.mxu0 %v3934_v19  ;;  %3167 = vmatpush3.bf16.msra.mxu1 %v4020_v47 }
 0x25a   :  { %3142 = vmatprep.subr.bf16.mxu0 %v3937_v20  ;;  %3168 = vmatprep.subr.bf16.mxu1 %v3672_v4 }
 0x25d   :  { %3144 = vmatpush1.bf16.msra.mxu0 %v3969_v29  ;;  %3170 = vmatpush3.bf16.msra.mxu1 %v4038_v51 }
 0x25e   :  { %3146 = vmatprep.subr.bf16.mxu0 %v3975_v31  ;;  %3171 = vmatprep.subr.bf16.mxu1 %v3672_v4 }
 0x261   :  { %3148 = vmatpush1.bf16.msra.mxu0 %v4004_v40  ;;  %3173 = vmatpush3.bf16.msra.mxu1 %v4052_v56 }
 0x262   :  { %3150 = vmatprep.subr.bf16.mxu0 %v4010_v43  ;;  %3174 = vmatprep.subr.bf16.mxu1 %v3672_v4 }
 0x265   :  { %3152 = vmatpush1.bf16.msra.mxu0 %v4034_v50  ;;  %3176 = vmatpush3.bf16.msra.mxu1 %v4066_v59 }
 0x266   :  { %3178 = vmatprep.subr.bf16.mxu0 %v3786_v32  ;;  %3209 = vmatprep.subr.bf16.mxu1 %v3672_v4 }
 0x31b   :  { %v795_v6 = vpop.f32.mrb[4].mxu0  ;;  %v866_v28 = vpop.f32.mrb[12].mxu1 }
 0x31c   :  { %v3508_v33 = vadd.f32 %v4125_v38, %v795_v6  ;;  %v797_v34 = vpop.f32.mrb[5].mxu0  ;;  %v2655_v35 = vpop.f32.mrb[13].mxu1  ;;  %v867_v48 = vadd.f32 %v866_v28, %v4131_v1 }
 0x31d   :  { %v3510_v2 = vadd.f32 %v4127_v42, %v797_v34 }
 0x31e   :  { %v2308_v0 = vmul.f32 -1.442695, %v3508_v33 }
 0x31f   :  { %v2309_v8 = vmul.f32 -1.442695, %v3510_v2 }
 0x320   :  { %3574 = vpow2.f32 %v2308_v0 }
 0x321   :  { %3576 = vpow2.f32 %v2309_v8 }
 0x32a   :  { %v3575_v23 = vpop.eup %3574 }
 0x32b   :  { %v874_v39 = vadd.f32 1.0, %v3575_v23  ;;  %v3577_v45 = vpop.eup %3576 }
 0x32c   :  { %v881_v46 = vadd.f32 1.0, %v3577_v45 }
 0x32d   :  { %3578 = vrcp.f32 %v874_v39 }
 0x32e   :  { %3580 = vrcp.f32 %v881_v46 }
 0x337   :  { %v3579_v49 = vpop.eup %3578 }
 0x338   :  { %v884_v54 = vmul.f32 %v3579_v49, %v867_v48  ;;  %v3581_v57 = vpop.eup %3580 }
 0x339   :  { %v887_v58 = vsub.f32 1.0, %v3581_v57  ;;  %v889_v11 = vmul.f32 %v3581_v57, %v4178_v27 }
 0x33a   :  { %v885_v55 = vadd.f32 %v884_v54, %v4112_v14 }
 0x33c   :  { %3582 = vtanh.f32 %v885_v55 }
 0x346   :  { %v3583_v63 = vpop.eup %3582 }
 0x347   :  { %v888_v5 = vmul.f32 %v3583_v63, %v887_v58 }
 0x349   :  { %v4222_v13 = vadd.f32 %v889_v11, %v888_v5 }
 0x34b   :  { %960 = vmatmul.mubr.f32.vlgmr.msra.gmra.mrb[6].mxu0 %v4222_v13  ;;  %2689 = vmatmul.mubr.f32.vlgmr.msra.gmra.mrb[14].mxu1 %v4222_v13 }
 0x34c   :  { %3180 = vmatpush1.bf16.msra.mxu0 %v3809_v41  ;;  %3211 = vmatpush3.bf16.msra.mxu1 %v3884_v3 }
 0x34d   :  { %3182 = vmatprep.subr.bf16.mxu0 %v3815_v44  ;;  %3212 = vmatprep.subr.bf16.mxu1 %v3672_v4 }
 0x34e   :  { %1125 = vmatprep.mubr.f32.mxu0 %v3671_v7  ;;  %2723 = vmatprep.mubr.msk.f32.mxu1 %vm3673_vm1, %v3671_v7 }
 0x350   :  { %3184 = vmatpush1.bf16.msra.mxu0 %v3838_v52  ;;  %3214 = vmatpush3.bf16.msra.mxu1 %v3918_v15 }
 0x351   :  { %3186 = vmatprep.subr.bf16.mxu0 %v3841_v53  ;;  %3215 = vmatprep.subr.bf16.mxu1 %v3672_v4 }
 0x354   :  { %3188 = vmatpush1.bf16.msra.mxu0 %v3867_v61  ;;  %3217 = vmatpush3.bf16.msra.mxu1 %v3953_v25 }
 0x355   :  { %3190 = vmatprep.subr.bf16.mxu0 %v3870_v62  ;;  %3218 = vmatprep.subr.bf16.mxu1 %v3672_v4 }
 0x358   :  { %3192 = vmatpush1.bf16.msra.mxu0 %v3899_v9  ;;  %3220 = vmatpush3.bf16.msra.mxu1 %v3991_v37 }
 0x359   :  { %3194 = vmatprep.subr.bf16.mxu0 %v3902_v10  ;;  %3221 = vmatprep.subr.bf16.mxu1 %v3672_v4 }
 0x35c   :  { %3196 = vmatpush1.bf16.msra.mxu0 %v3934_v19  ;;  %3223 = vmatpush3.bf16.msra.mxu1 %v4020_v47 }
 0x35d   :  { %3198 = vmatprep.subr.bf16.mxu0 %v3937_v20  ;;  %3224 = vmatprep.subr.bf16.mxu1 %v3672_v4 }
 0x360   :  { %3200 = vmatpush1.bf16.msra.mxu0 %v3969_v29  ;;  %3226 = vmatpush3.bf16.msra.mxu1 %v4038_v51 }
 0x361   :  { %3202 = vmatprep.subr.bf16.mxu0 %v3975_v31  ;;  %3227 = vmatprep.subr.bf16.mxu1 %v3672_v4 }
 0x364   :  { %3204 = vmatpush1.bf16.msra.mxu0 %v4004_v40  ;;  %3229 = vmatpush3.bf16.msra.mxu1 %v4052_v56 }
 0x365   :  { %3206 = vmatprep.subr.bf16.mxu0 %v4010_v43  ;;  %3230 = vmatprep.subr.bf16.mxu1 %v3672_v4 }
 0x368   :  { %3208 = vmatpush1.bf16.msra.mxu0 %v4034_v50  ;;  %3232 = vmatpush3.bf16.msra.mxu1 %v4066_v59 }
 0x369   :  { %3234 = vmatprep.subr.bf16.mxu0 %v3786_v32  ;;  %3265 = vmatprep.subr.bf16.mxu1 %v3672_v4 }
 0x41e   :  { %v961_v14 = vpop.f32.mrb[6].mxu0  ;;  %v1032_v16 = vpop.f32.mrb[14].mxu1 }
 0x41f   :  { %v3512_v18 = vadd.f32 %v4125_v38, %v961_v14  ;;  %v963_v22 = vpop.f32.mrb[7].mxu0  ;;  %v2690_v24 = vpop.f32.mrb[15].mxu1  ;;  %v1033_v8 = vadd.f32 %v1032_v16, %v4131_v1 }
 0x420   :  { %v3514_v28 = vadd.f32 %v4127_v42, %v963_v22 }
 0x421   :  { %v2310_v6 = vmul.f32 -1.442695, %v3512_v18 }
 0x422   :  { %v2311_v33 = vmul.f32 -1.442695, %v3514_v28 }
 0x423   :  { %3584 = vpow2.f32 %v2310_v6 }
 0x424   :  { %3586 = vpow2.f32 %v2311_v33 }
 0x42d   :  { %v3585_v34 = vpop.eup %3584 }
 0x42e   :  { %v1040_v35 = vadd.f32 1.0, %v3585_v34  ;;  %v3587_v0 = vpop.eup %3586 }
 0x42f   :  { %v1047_v2 = vadd.f32 1.0, %v3587_v0 }
 0x430   :  { %3588 = vrcp.f32 %v1040_v35 }
 0x431   :  { %3590 = vrcp.f32 %v1047_v2 }
 0x43a   :  { %v3589_v23 = vpop.eup %3588 }
 0x43b   :  { %v1050_v39 = vmul.f32 %v3589_v23, %v1033_v8  ;;  %v3591_v46 = vpop.eup %3590 }
 0x43c   :  { %v1053_v48 = vsub.f32 1.0, %v3591_v46  ;;  %v1055_v55 = vmul.f32 %v3591_v46, %v4222_v13 }
 0x43d   :  { %v1051_v45 = vadd.f32 %v1050_v39, %v4110_v12 }
 0x43f   :  { %3592 = vtanh.f32 %v1051_v45 }
 0x449   :  { %v3593_v49 = vpop.eup %3592 }
 0x44a   :  { %v1054_v54 = vmul.f32 %v3593_v49, %v1053_v48 }
 0x44c   :  { %v4266_v57 = vadd.f32 %v1055_v55, %v1054_v54 }
 0x44e   :  { %1126 = vmatmul.mubr.f32.vlgmr.msra.gmra.mrb[8].mxu0 %v4266_v57  ;;  %2724 = vmatmul.mubr.f32.vlgmr.msra.gmra.mrb[16].mxu1 %v4266_v57 }
 0x44f   :  { %3236 = vmatpush1.bf16.msra.mxu0 %v3809_v41  ;;  %3267 = vmatpush3.bf16.msra.mxu1 %v3884_v3 }
 0x450   :  { %3238 = vmatprep.subr.bf16.mxu0 %v3815_v44  ;;  %3268 = vmatprep.subr.bf16.mxu1 %v3672_v4 }
 0x451   :  { %1291 = vmatprep.mubr.f32.mxu0 %v3671_v7  ;;  %2758 = vmatprep.mubr.msk.f32.mxu1 %vm3673_vm1, %v3671_v7 }
 0x453   :  { %3240 = vmatpush1.bf16.msra.mxu0 %v3838_v52  ;;  %3270 = vmatpush3.bf16.msra.mxu1 %v3918_v15 }
 0x454   :  { %3242 = vmatprep.subr.bf16.mxu0 %v3841_v53  ;;  %3271 = vmatprep.subr.bf16.mxu1 %v3672_v4 }
 0x457   :  { %3244 = vmatpush1.bf16.msra.mxu0 %v3867_v61  ;;  %3273 = vmatpush3.bf16.msra.mxu1 %v3953_v25 }
 0x458   :  { %3246 = vmatprep.subr.bf16.mxu0 %v3870_v62  ;;  %3274 = vmatprep.subr.bf16.mxu1 %v3672_v4 }
 0x45b   :  { %3248 = vmatpush1.bf16.msra.mxu0 %v3899_v9  ;;  %3276 = vmatpush3.bf16.msra.mxu1 %v3991_v37 }
 0x45c   :  { %3250 = vmatprep.subr.bf16.mxu0 %v3902_v10  ;;  %3277 = vmatprep.subr.bf16.mxu1 %v3672_v4 }
 0x45f   :  { %3252 = vmatpush1.bf16.msra.mxu0 %v3934_v19  ;;  %3279 = vmatpush3.bf16.msra.mxu1 %v4020_v47 }
 0x460   :  { %3254 = vmatprep.subr.bf16.mxu0 %v3937_v20  ;;  %3280 = vmatprep.subr.bf16.mxu1 %v3672_v4 }
 0x463   :  { %3256 = vmatpush1.bf16.msra.mxu0 %v3969_v29  ;;  %3282 = vmatpush3.bf16.msra.mxu1 %v4038_v51 }
 0x464   :  { %3258 = vmatprep.subr.bf16.mxu0 %v3975_v31  ;;  %3283 = vmatprep.subr.bf16.mxu1 %v3672_v4 }
 0x467   :  { %3260 = vmatpush1.bf16.msra.mxu0 %v4004_v40  ;;  %3285 = vmatpush3.bf16.msra.mxu1 %v4052_v56 }
 0x468   :  { %3262 = vmatprep.subr.bf16.mxu0 %v4010_v43  ;;  %3286 = vmatprep.subr.bf16.mxu1 %v3672_v4 }
 0x46b   :  { %3264 = vmatpush1.bf16.msra.mxu0 %v4034_v50  ;;  %3288 = vmatpush3.bf16.msra.mxu1 %v4066_v59 }
 0x46c   :  { %3290 = vmatprep.subr.bf16.mxu0 %v3786_v32  ;;  %3321 = vmatprep.subr.bf16.mxu1 %v3672_v4 }
 0x521   :  { %v1127_v12 = vpop.f32.mrb[8].mxu0  ;;  %v1198_v58 = vpop.f32.mrb[16].mxu1 }
 0x522   :  { %v3516_v63 = vadd.f32 %v4125_v38, %v1127_v12  ;;  %v1129_v5 = vpop.f32.mrb[9].mxu0  ;;  %v2725_v11 = vpop.f32.mrb[17].mxu1  ;;  %v1199_v33 = vadd.f32 %v1198_v58, %v4131_v1 }
 0x523   :  { %v3518_v16 = vadd.f32 %v4127_v42, %v1129_v5 }
 0x524   :  { %v2312_v14 = vmul.f32 -1.442695, %v3516_v63 }
 0x525   :  { %v2313_v18 = vmul.f32 -1.442695, %v3518_v16 }
 0x526   :  { %3594 = vpow2.f32 %v2312_v14 }
 0x527   :  { %3596 = vpow2.f32 %v2313_v18 }
 0x530   :  { %v3595_v22 = vpop.eup %3594 }
 0x531   :  { %v1206_v24 = vadd.f32 1.0, %v3595_v22  ;;  %v3597_v6 = vpop.eup %3596 }
 0x532   :  { %v1213_v28 = vadd.f32 1.0, %v3597_v6 }
 0x533   :  { %3598 = vrcp.f32 %v1206_v24 }
 0x534   :  { %3600 = vrcp.f32 %v1213_v28 }
 0x53d   :  { %v3599_v34 = vpop.eup %3598 }
 0x53e   :  { %v1216_v35 = vmul.f32 %v3599_v34, %v1199_v33  ;;  %v3601_v2 = vpop.eup %3600 }
 0x53f   :  { %v1219_v8 = vsub.f32 1.0, %v3601_v2  ;;  %v1221_v45 = vmul.f32 %v3601_v2, %v4266_v57  ;;  %v1755_v2 = vld [vmem:[%s4699_s4 + $0x10] sm:$0xff] }
 0x540   :  { %v1217_v0 = vadd.f32 %v1216_v35, %v4116_v21 }
 0x542   :  { %3602 = vtanh.f32 %v1217_v0 }
 0x54c   :  { %v3603_v23 = vpop.eup %3602 }
 0x54d   :  { %v1220_v39 = vmul.f32 %v3603_v23, %v1219_v8  ;;  %v1756_v8 = vld [vmem:[%s4699_s4 + $0x18] sm:$0xff] }
 0x54e   :  { %v3405_v23 = vpack.c.bf16 %v1756_v8, %v1755_v2 }
 0x54f   :  { %v4310_v46 = vadd.f32 %v1221_v45, %v1220_v39  ;;  %v1757_v39 = vld [vmem:[%s4699_s4 + $0x20] sm:$0xff]  ;;  %v1758_v45 = vld [vmem:[%s4699_s4 + $0x28] sm:$0xff] }
 0x551   :  { %1292 = vmatmul.mubr.f32.vlgmr.msra.gmra.mrb[10].mxu0 %v4310_v46  ;;  %2759 = vmatmul.mubr.f32.vlgmr.msra.gmra.mrb[18].mxu1 %v4310_v46 }
 0x552   :  { %3292 = vmatpush1.bf16.msra.mxu0 %v3809_v41  ;;  %3323 = vmatpush3.bf16.msra.mxu1 %v3884_v3 }
 0x553   :  { %3294 = vmatprep.subr.bf16.mxu0 %v3815_v44  ;;  %3324 = vmatprep.subr.bf16.mxu1 %v3672_v4 }
 0x554   :  { %1457 = vmatprep.mubr.f32.mxu0 %v3671_v7  ;;  %2793 = vmatprep.mubr.msk.f32.mxu1 %vm3673_vm1, %v3671_v7 }
 0x556   :  { %3296 = vmatpush1.bf16.msra.mxu0 %v3838_v52  ;;  %3326 = vmatpush3.bf16.msra.mxu1 %v3918_v15 }
 0x557   :  { %3298 = vmatprep.subr.bf16.mxu0 %v3841_v53  ;;  %3327 = vmatprep.subr.bf16.mxu1 %v3672_v4 }
 0x55a   :  { %3300 = vmatpush1.bf16.msra.mxu0 %v3867_v61  ;;  %3329 = vmatpush3.bf16.msra.mxu1 %v3953_v25 }
 0x55b   :  { %3302 = vmatprep.subr.bf16.mxu0 %v3870_v62  ;;  %3330 = vmatprep.subr.bf16.mxu1 %v3672_v4 }
 0x55e   :  { %3304 = vmatpush1.bf16.msra.mxu0 %v3899_v9  ;;  %3332 = vmatpush3.bf16.msra.mxu1 %v3991_v37 }
 0x55f   :  { %3306 = vmatprep.subr.bf16.mxu0 %v3902_v10  ;;  %3333 = vmatprep.subr.bf16.mxu1 %v3672_v4 }
 0x562   :  { %3308 = vmatpush1.bf16.msra.mxu0 %v3934_v19  ;;  %3335 = vmatpush3.bf16.msra.mxu1 %v4020_v47 }
 0x563   :  { %3310 = vmatprep.subr.bf16.mxu0 %v3937_v20  ;;  %3336 = vmatprep.subr.bf16.mxu1 %v3672_v4 }
 0x566   :  { %3312 = vmatpush1.bf16.msra.mxu0 %v3969_v29  ;;  %3338 = vmatpush3.bf16.msra.mxu1 %v4038_v51 }
 0x567   :  { %3314 = vmatprep.subr.bf16.mxu0 %v3975_v31  ;;  %3339 = vmatprep.subr.bf16.mxu1 %v3672_v4 }
 0x56a   :  { %3316 = vmatpush1.bf16.msra.mxu0 %v4004_v40  ;;  %3341 = vmatpush3.bf16.msra.mxu1 %v4052_v56 }
 0x56b   :  { %3318 = vmatprep.subr.bf16.mxu0 %v4010_v43  ;;  %3342 = vmatprep.subr.bf16.mxu1 %v3672_v4 }
 0x56e   :  { %3320 = vmatpush1.bf16.msra.mxu0 %v4034_v50  ;;  %3344 = vmatpush3.bf16.msra.mxu1 %v4066_v59 }
 0x56f   :  { %3346 = vmatprep.subr.bf16.mxu0 %v3786_v32  ;;  %3377 = vmatprep.subr.bf16.mxu1 %v3672_v4 }
 0x624   :  { %v1293_v21 = vpop.f32.mrb[10].mxu0  ;;  %v1364_v48 = vpop.f32.mrb[18].mxu1 }
 0x625   :  { %v3520_v49 = vadd.f32 %v4125_v38, %v1293_v21  ;;  %v1295_v54 = vpop.f32.mrb[11].mxu0  ;;  %v2760_v55 = vpop.f32.mrb[19].mxu1  ;;  %v1365_v32 = vadd.f32 %v1364_v48, %v4131_v1  ;;  %v3409_v21 = vpack.c.bf16 %v1758_v45, %v1757_v39  ;;  %v1759_v48 = vld [vmem:[%s4699_s4 + $0x30] sm:$0xff] }
 0x626   :  { %v3522_v58 = vadd.f32 %v4127_v42, %v1295_v54  ;;  %v1761_v55 = vld [vmem:[%s4699_s4 + $0x40] sm:$0xff] }
 0x627   :  { %v2314_v12 = vmul.f32 -1.442695, %v3520_v49  ;;  %v1760_v49 = vld [vmem:[%s4699_s4 + $0x38] sm:$0xff] }
 0x628   :  { %v2315_v63 = vmul.f32 -1.442695, %v3522_v58  ;;  %v3413_v54 = vpack.c.bf16 %v1760_v49, %v1759_v48 }
 0x629   :  { %3604 = vpow2.f32 %v2314_v12  ;;  %v1762_v12 = vld [vmem:[%s4699_s4 + $0x48] sm:$0xff] }
 0x62a   :  { %3606 = vpow2.f32 %v2315_v63  ;;  %v3417_v58 = vpack.c.bf16 %v1762_v12, %v1761_v55  ;;  %v1763_v63 = vld [vmem:[%s4699_s4 + $0x50] sm:$0xff] }
 0x633   :  { %v3605_v5 = vpop.eup %3604 }
 0x634   :  { %v1372_v11 = vadd.f32 1.0, %v3605_v5  ;;  %v3607_v14 = vpop.eup %3606  ;;  %v1764_v5 = vld [vmem:[%s4699_s4 + $0x58] sm:$0xff] }
 0x635   :  { %v1379_v16 = vadd.f32 1.0, %v3607_v14  ;;  %v3421_v14 = vpack.c.bf16 %v1764_v5, %v1763_v63 }
 0x636   :  { %3608 = vrcp.f32 %v1372_v11  ;;  %v1765_v11 = vld [vmem:[%s4699_s4 + $0x60] sm:$0xff] }
 0x637   :  { %3610 = vrcp.f32 %v1379_v16  ;;  %v1766_v16 = vld [vmem:[%s4699_s4 + $0x68] sm:$0xff] }
 0x640   :  { %v3609_v18 = vpop.eup %3608 }
 0x641   :  { %v1382_v22 = vmul.f32 %v3609_v18, %v1365_v32  ;;  %v3611_v6 = vpop.eup %3610  ;;  %v3425_v32 = vpack.c.bf16 %v1766_v16, %v1765_v11  ;;  %v1767_v18 = vld [vmem:[%s4699_s4 + $0x70] sm:$0xff]  ;;  %v2023_v11 = vld [vmem:[%s4700_s5 + $0xa8] sm:$0xff] }
 0x642   :  { %v1385_v28 = vsub.f32 1.0, %v3611_v6  ;;  %v1387_v35 = vmul.f32 %v3611_v6, %v4310_v46  ;;  %v1878_v6 = vld [vmem:[%s4696_s1 + $0x10] sm:$0xff] }
 0x643   :  { %v1383_v24 = vadd.f32 %v1382_v22, %v4114_v17  ;;  %v1754_v17 = vld [vmem:[%s4699_s4 + $0x8] sm:$0xff]  ;;  %v1768_v22 = vld [vmem:[%s4699_s4 + $0x78] sm:$0xff]  ;;  %vm1886_vm2 = vcmp.eq.f32.partialorder %v1878_v6, 0.0  ;;  %v2024_v16 = vld [vmem:[%s4700_s5 + $0xb0] sm:$0xff] }
 0x645   :  { %3612 = vtanh.f32 %v1383_v24  ;;  %v3429_v24 = vpack.c.bf16 %v1768_v22, %v1767_v18  ;;  %v2026_v22 = vld [vmem:[%s4700_s5 + $0xc0] sm:$0xff] }
 0x64f   :  { %v3613_v33 = vpop.eup %3612 }
 0x650   :  { %v1386_v34 = vmul.f32 %v3613_v33, %v1385_v28  ;;  %v1876_v28 = vld [vmem:[%s4696_s1] sm:$0xff]  ;;  %v1879_v33 = vld [vmem:[%s4696_s1 + $0x18] sm:$0xff] }
 0x651   :  { %vm1884_vm3 = vcmp.eq.f32.partialorder %v1876_v28, 0.0  ;;  %vm1887_vm4 = vcmp.eq.f32.partialorder %v1879_v33, 0.0  ;;  %v2002_v28 = vld [vmem:[%s4700_s5] sm:$0xff]  ;;  %v2003_v33 = vld [vmem:[%s4700_s5 + $0x8] sm:$0xff] }
 0x652   :  { %v4354_v0 = vadd.f32 %v1387_v35, %v1386_v34  ;;  %v3674_v34 = vmov 0   ;;  %v1877_v35 = vld [vmem:[%s4696_s1 + $0x8] sm:$0xff] }
 0x653   :  { %3553 = vset.pattern.permute.xlu1 %v3674_v34  ;;  %3552 = vset.pattern.permute.xlu0 %v3674_v34  ;;  %vm1885_vm5 = vcmp.eq.f32.partialorder %v1877_v35, 0.0  ;;  %v2028_v35 = vld [vmem:[%s4700_s5 + $0xd0] sm:$0xff] }
 0x654   :  { %1458 = vmatmul.mubr.f32.vlgmr.msra.gmra.mrb[12].mxu0 %v4354_v0  ;;  %2794 = vmatmul.mubr.f32.vlgmr.msra.gmra.mrb[20].mxu1 %v4354_v0 }
 0x655   :  { %3348 = vmatpush1.bf16.msra.mxu0 %v3809_v41  ;;  %3379 = vmatpush3.bf16.msra.mxu1 %v3884_v3 }
 0x656   :  { %3350 = vmatprep.subr.bf16.mxu0 %v3815_v44  ;;  %3380 = vmatprep.subr.bf16.mxu1 %v3672_v4 }
 0x657   :  { %1623 = vmatprep.mubr.f32.mxu0 %v3671_v7  ;;  %2828 = vmatprep.mubr.msk.f32.mxu1 %vm3673_vm1, %v3671_v7 }
 0x659   :  { %3352 = vmatpush1.bf16.msra.mxu0 %v3838_v52  ;;  %3382 = vmatpush3.bf16.msra.mxu1 %v3918_v15 }
 0x65a   :  { %3354 = vmatprep.subr.bf16.mxu0 %v3841_v53  ;;  %3383 = vmatprep.subr.bf16.mxu1 %v3672_v4 }
 0x65d   :  { %3356 = vmatpush1.bf16.msra.mxu0 %v3867_v61  ;;  %3385 = vmatpush3.bf16.msra.mxu1 %v3953_v25 }
 0x65e   :  { %3358 = vmatprep.subr.bf16.mxu0 %v3870_v62  ;;  %3386 = vmatprep.subr.bf16.mxu1 %v3672_v4 }
 0x661   :  { %3360 = vmatpush1.bf16.msra.mxu0 %v3899_v9  ;;  %3388 = vmatpush3.bf16.msra.mxu1 %v3991_v37 }
 0x662   :  { %3362 = vmatprep.subr.bf16.mxu0 %v3902_v10  ;;  %3389 = vmatprep.subr.bf16.mxu1 %v3672_v4 }
 0x665   :  { %3364 = vmatpush1.bf16.msra.mxu0 %v3934_v19  ;;  %3391 = vmatpush3.bf16.msra.mxu1 %v4020_v47 }
 0x666   :  { %3366 = vmatprep.subr.bf16.mxu0 %v3937_v20  ;;  %3392 = vmatprep.subr.bf16.mxu1 %v3672_v4 }
 0x669   :  { %3368 = vmatpush1.bf16.msra.mxu0 %v3969_v29  ;;  %3394 = vmatpush3.bf16.msra.mxu1 %v4038_v51 }
 0x66a   :  { %3370 = vmatprep.subr.bf16.mxu0 %v3975_v31  ;;  %3395 = vmatprep.subr.bf16.mxu1 %v3672_v4 }
 0x66d   :  { %3372 = vmatpush1.bf16.msra.mxu0 %v4004_v40  ;;  %3397 = vmatpush3.bf16.msra.mxu1 %v4052_v56 }
 0x66e   :  { %3374 = vmatprep.subr.bf16.mxu0 %v4010_v43  ;;  %3398 = vmatprep.subr.bf16.mxu1 %v3672_v4 }
 0x671   :  { %3376 = vmatpush1.bf16.msra.mxu0 %v4034_v50  ;;  %3400 = vmatpush3.bf16.msra.mxu1 %v4066_v59  ;;  %v1753_v59 = vld [vmem:[%s4699_s4] sm:$0xff] }
 0x672   :  { %3433 = vmatprep.subr.bf16.mxu1 %v3672_v4 }
 0x727   :  { %v1459_v41 = vpop.f32.mrb[12].mxu0  ;;  %v1530_v44 = vpop.f32.mrb[20].mxu1 }
 0x728   :  { %v3524_v52 = vadd.f32 %v4125_v38, %v1459_v41  ;;  %v1461_v53 = vpop.f32.mrb[13].mxu0  ;;  %v2795_v61 = vpop.f32.mrb[21].mxu1  ;;  %v1531_v25 = vadd.f32 %v1530_v44, %v4131_v1  ;;  %v1894_v41 = vsel %vm1886_vm2, 1, %v3674_v34  ;;  %v1892_v44 = vsel %vm1884_vm3, 1, %v3674_v34 }
 0x729   :  { %v3526_v3 = vadd.f32 %v4127_v42, %v1461_v53  ;;  %v1880_v53 = vld [vmem:[%s4696_s1 + $0x20] sm:$0xff]  ;;  %1907 = vperm.xlu1 %3553, %v1894_v41   ;;  %1901 = vperm.xlu0 %3552, %v1892_v44   ;;  %v1895_v61 = vsel %vm1887_vm4, 1, %v3674_v34  ;;  %v2029_v41 = vld [vmem:[%s4700_s5 + $0xd8] sm:$0xff]  ;;  %vm2200_vm3 = vcmask 261120  }
 0x72a   :  { %v2316_v62 = vmul.f32 -1.442695, %v3524_v52  ;;  %v1881_v52 = vld [vmem:[%s4696_s1 + $0x28] sm:$0xff]  ;;  %vm1888_vm7 = vcmp.eq.f32.partialorder %v1880_v53, 0.0  ;;  %v3449_v44 = vpack.c.bf16 %v2029_v41, %v2028_v35  ;;  %v2005_v53 = vld [vmem:[%s4700_s5 + $0x18] sm:$0xff] }
 0x72b   :  { %v2317_v9 = vmul.f32 -1.442695, %v3526_v3  ;;  %vm1889_vm6 = vcmp.eq.f32.partialorder %v1881_v52, 0.0  ;;  %v1883_v3 = vld [vmem:[%s4696_s1 + $0x38] sm:$0xff]  ;;  %v2004_v52 = vld [vmem:[%s4700_s5 + $0x10] sm:$0xff] }
 0x72c   :  { %3614 = vpow2.f32 %v2316_v62  ;;  %v1893_v62 = vsel %vm1885_vm5, 1, %v3674_v34  ;;  %vm1891_vm8 = vcmp.eq.f32.partialorder %v1883_v3, 0.0  ;;  %v2031_v3 = vld [vmem:[%s4700_s5 + $0xe8] sm:$0xff] }
 0x72d   :  { %3616 = vpow2.f32 %v2317_v9  ;;  %v1882_v9 = vld [vmem:[%s4696_s1 + $0x30] sm:$0xff]  ;;  %1910 = vperm.xlu1 %3553, %v1895_v61   ;;  %1904 = vperm.xlu0 %3552, %v1893_v62   ;;  %v3473_v61 = vpack.c.bf16 %v2005_v53, %v2004_v52  ;;  %v2030_v62 = vld [vmem:[%s4700_s5 + $0xe0] sm:$0xff] }
 0x72e   :  { %vm1890_vm9 = vcmp.eq.f32.partialorder %v1882_v9, 0.0  ;;  %v3452_v9 = vpack.c.bf16 %v2031_v3, %v2030_v62 }
 0x736   :  { %v3615_v10 = vpop.eup %3614 }
 0x737   :  { %v1538_v15 = vadd.f32 1.0, %v3615_v10  ;;  %v3617_v19 = vpop.eup %3616  ;;  %v1897_v10 = vsel %vm1889_vm6, 1, %v3674_v34 }
 0x738   :  { %v1545_v20 = vadd.f32 1.0, %v3617_v19  ;;  %1916 = vperm.xlu1 %3553, %v1897_v10   ;;  %v1899_v19 = vsel %vm1891_vm8, 1, %v3674_v34  ;;  %v2006_v10 = vld [vmem:[%s4700_s5 + $0x20] sm:$0xff] }
 0x739   :  { %3618 = vrcp.f32 %v1538_v15  ;;  %v1896_v15 = vsel %vm1888_vm7, 1, %v3674_v34 }
 0x73a   :  { %3620 = vrcp.f32 %v1545_v20  ;;  %1913 = vperm.xlu0 %3552, %v1896_v15   ;;  %v1898_v20 = vsel %vm1890_vm9, 1, %v3674_v34  ;;  %v3470_v34 = vpack.c.bf16 %v2003_v33, %v2002_v28  ;;  %v2007_v15 = vld [vmem:[%s4700_s5 + $0x28] sm:$0xff] }
 0x73c   :  { %1922 = vperm.xlu1 %3553, %v1899_v19   ;;  %v3476_v19 = vpack.c.bf16 %v2007_v15, %v2006_v10 }
 0x73e   :  { %1919 = vperm.xlu0 %3552, %v1898_v20   ;;  %v2032_v20 = vld [vmem:[%s4700_s5 + $0xf0] sm:$0xff] }
 0x743   :  { %v3619_v29 = vpop.eup %3618 }
 0x744   :  { %v1548_v31 = vmul.f32 %v3619_v29, %v1531_v25  ;;  %v3621_v40 = vpop.eup %3620 }
 0x745   :  { %v1551_v43 = vsub.f32 1.0, %v3621_v40  ;;  %v1553_v51 = vmul.f32 %v3621_v40, %v4354_v0 }
 0x746   :  { %v1549_v37 = vadd.f32 %v1548_v31, %v4123_v30  ;;  %v3401_v30 = vpack.c.bf16 %v1754_v17, %v1753_v59 }
 0x748   :  { %3622 = vtanh.f32 %v1549_v37  ;;  %3402 = vmatprep.subr.bf16.mxu0 %v3401_v30 }
 0x752   :  { %v3623_v47 = vpop.eup %3622 }
 0x753   :  { %v1552_v50 = vmul.f32 %v3623_v47, %v1551_v43 }
 0x755   :  { %v4397_v56 = vadd.f32 %v1553_v51, %v1552_v50 }
 0x757   :  { %1624 = vmatmul.mubr.f32.vlgmr.msra.gmra.mrb[14].mxu0 %v4397_v56  ;;  %2829 = vmatmul.mubr.f32.vlgmr.msra.gmra.mrb[22].mxu1 %v4397_v56 }
 0x758   :  { %3404 = vmatpush3.bf16.msra.mxu0 %v3401_v30 }
 0x759   :  { %3406 = vmatprep.subr.bf16.mxu0 %v3405_v23 }
 0x75c   :  { %3408 = vmatpush3.bf16.msra.mxu0 %v3405_v23 }
 0x75d   :  { %3410 = vmatprep.subr.bf16.mxu0 %v3409_v21 }
 0x760   :  { %3412 = vmatpush3.bf16.msra.mxu0 %v3409_v21 }
 0x761   :  { %3414 = vmatprep.subr.bf16.mxu0 %v3413_v54 }
 0x764   :  { %3416 = vmatpush3.bf16.msra.mxu0 %v3413_v54 }
 0x765   :  { %3418 = vmatprep.subr.bf16.mxu0 %v3417_v58 }
 0x768   :  { %3420 = vmatpush3.bf16.msra.mxu0 %v3417_v58 }
 0x769   :  { %3422 = vmatprep.subr.bf16.mxu0 %v3421_v14 }
 0x76c   :  { %3424 = vmatpush3.bf16.msra.mxu0 %v3421_v14 }
 0x76d   :  { %3426 = vmatprep.subr.bf16.mxu0 %v3425_v32 }
 0x770   :  { %3428 = vmatpush3.bf16.msra.mxu0 %v3425_v32  ;;  %v2025_v32 = vld [vmem:[%s4700_s5 + $0xb8] sm:$0xff] }
 0x771   :  { %3430 = vmatprep.subr.bf16.mxu0 %v3429_v24  ;;  %v3443_v18 = vpack.c.bf16 %v2025_v32, %v2024_v16 }
 0x774   :  { %3432 = vmatpush3.bf16.msra.mxu0 %v3429_v24  ;;  %v2027_v24 = vld [vmem:[%s4700_s5 + $0xc8] sm:$0xff] }
 0x775   :  { %3469 = vmatprep.subr.bf16.mxu0 %v3672_v4  ;;  %v3446_v6 = vpack.c.bf16 %v2027_v24, %v2026_v22 }
 0x7a8   :  { %v1902_v16 = vpop.permute.xlu0 %1901 }
 0x7a9   :  { %vm1924_vm12 = vcmp.eq.s32.totalorder %v1902_v16, 1 }
 0x82a   :  { %v1625_v25 = vpop.f32.mrb[14].mxu0  ;;  %v1696_v29 = vpop.f32.mrb[22].mxu1 }
 0x82b   :  { %v3528_v31 = vadd.f32 %v4125_v38, %v1625_v25  ;;  %v1627_v37 = vpop.f32.mrb[15].mxu0  ;;  %v2830_v40 = vpop.f32.mrb[23].mxu1  ;;  %v1697_v2 = vadd.f32 %v1696_v29, %v4131_v1  ;;  %v2033_v25 = vld [vmem:[%s4700_s5 + $0xf8] sm:$0xff]  ;;  %v2008_v29 = vld [vmem:[%s4700_s5 + $0x30] sm:$0xff] }
 0x82c   :  { %v3530_v47 = vadd.f32 %v4127_v42, %v1627_v37  ;;  %v1725_v42 = vand.u32 127, %v124_v60  ;;  %v2009_v37 = vld [vmem:[%s4700_s5 + $0x38] sm:$0xff]  ;;  %v2034_v40 = vld [vmem:[%s4700_s5 + $0x100] sm:$0xff] }
 0x82d   :  { %v2318_v43 = vmul.f32 -1.442695, %v3528_v31  ;;  %v3455_v31 = vpack.c.bf16 %v2033_v25, %v2032_v20 }
 0x82e   :  { %v2319_v50 = vmul.f32 -1.442695, %v3530_v47  ;;  %vm1726_vm10 = vcmp.lt.s32.totalorder %v1725_v42, 32  ;;  %v3479_v47 = vpack.c.bf16 %v2009_v37, %v2008_v29  ;;  %v2039_v42 = vld [vmem:[%s4700_s5 + $0x128] sm:$0xff] }
 0x82f   :  { %3624 = vpow2.f32 %v2318_v43  ;;  %v4486_v1 = vsel %vm1726_vm10, %v4178_v27, %v4397_v56  ;;  %v4496_v60 = vsel %vm1726_vm10, %v4266_v57, %v4310_v46  ;;  %v4501_v12 = vsel %vm1726_vm10, %v4310_v46, %v4266_v57  ;;  %v2019_v57 = vld [vmem:[%s4700_s5 + $0x88] sm:$0xff]  ;;  %v2021_v46 = vld [vmem:[%s4700_s5 + $0x98] sm:$0xff] }
 0x830   :  { %3626 = vpow2.f32 %v2319_v50  ;;  %v4506_v58 = vsel %vm1726_vm10, %v4354_v0, %v4222_v13  ;;  %v4511_v63 = vsel %vm1726_vm10, %v4397_v56, %v4178_v27  ;;  %v2035_v43 = vld [vmem:[%s4700_s5 + $0x108] sm:$0xff]  ;;  %v2010_v50 = vld [vmem:[%s4700_s5 + $0x40] sm:$0xff] }
 0x839   :  { %v3625_v51 = vpop.eup %3624 }
 0x83a   :  { %v1704_v59 = vadd.f32 1.0, %v3625_v51  ;;  %v3627_v17 = vpop.eup %3626  ;;  %v2011_v51 = vld [vmem:[%s4700_s5 + $0x48] sm:$0xff] }
 0x83b   :  { %v1711_v30 = vadd.f32 1.0, %v3627_v17  ;;  %v3482_v17 = vpack.c.bf16 %v2011_v51, %v2010_v50 }
 0x83c   :  { %3628 = vrcp.f32 %v1704_v59  ;;  %v3458_v59 = vpack.c.bf16 %v2035_v43, %v2034_v40 }
 0x83d   :  { %3630 = vrcp.f32 %v1711_v30  ;;  %v2036_v30 = vld [vmem:[%s4700_s5 + $0x110] sm:$0xff] }
 0x846   :  { %v3629_v8 = vpop.eup %3628 }
 0x847   :  { %v1714_v23 = vmul.f32 %v3629_v8, %v1697_v2  ;;  %v3631_v39 = vpop.eup %3630  ;;  %v2037_v2 = vld [vmem:[%s4700_s5 + $0x118] sm:$0xff]  ;;  %v2012_v8 = vld [vmem:[%s4700_s5 + $0x50] sm:$0xff] }
 0x848   :  { %v1717_v45 = vsub.f32 1.0, %v3631_v39  ;;  %v1719_v49 = vmul.f32 %v3631_v39, %v4397_v56  ;;  %v2022_v56 = vld [vmem:[%s4700_s5 + $0xa0] sm:$0xff]  ;;  %v3461_v39 = vpack.c.bf16 %v2037_v2, %v2036_v30 }
 0x849   :  { %v1715_v38 = vadd.f32 %v1714_v23, %v4121_v26  ;;  %v4491_v26 = vsel %vm1726_vm10, %v4222_v13, %v4354_v0  ;;  %v2018_v13 = vld [vmem:[%s4700_s5 + $0x80] sm:$0xff]  ;;  %v3440_v14 = vpack.c.bf16 %v2023_v11, %v2022_v56  ;;  %v2013_v23 = vld [vmem:[%s4700_s5 + $0x58] sm:$0xff] }
 0x84a   :  { %v3434_v27 = vpack.c.bf16 %v2019_v57, %v2018_v13  ;;  %v2040_v57 = vld [vmem:[%s4700_s5 + $0x130] sm:$0xff]  ;;  %v2043_v11 = vld [vmem:[%s4697_s2] sm:$0xff] }
 0x84b   :  { %3632 = vtanh.f32 %v1715_v38  ;;  %v2044_v38 = vld [vmem:[%s4697_s2 + $0x8] sm:$0xff] }
 0x84c   :  { %3435 = vmatpush1.bf16.msra.mxu1 %v3434_v27  ;;  %2320 = vmatprep.mubr.msk.f32.mxu1 %vm139_vm0, %v2044_v38  ;;  %v2041_v27 = vld [vmem:[%s4700_s5 + $0x138] sm:$0xff] }
 0x84d   :  { %3436 = vmatprep.subr.bf16.mxu1 %v3672_v4 }
 0x855   :  { %v3633_v21 = vpop.eup %3632 }
 0x856   :  { %v1718_v48 = vmul.f32 %v3633_v21, %v1717_v45  ;;  %v3485_v45 = vpack.c.bf16 %v2013_v23, %v2012_v8  ;;  %v2038_v21 = vld [vmem:[%s4700_s5 + $0x120] sm:$0xff] }
 0x858   :  { %v1720_v54 = vadd.f32 %v1719_v49, %v1718_v48  ;;  %v2014_v48 = vld [vmem:[%s4700_s5 + $0x60] sm:$0xff]  ;;  %v2015_v49 = vld [vmem:[%s4700_s5 + $0x68] sm:$0xff] }
 0x859   :  { %v3488_v13 = vpack.c.bf16 %v2015_v49, %v2014_v48 }
 0x85a   :  { %v4481_v55 = vsel %vm1726_vm10, %v4134_v36, %v1720_v54  ;;  %v4515_v5 = vsel %vm1726_vm10, %v1720_v54, %v4134_v36  ;;  %v2020_v36 = vld [vmem:[%s4700_s5 + $0x90] sm:$0xff]  ;;  %v3464_v54 = vpack.c.bf16 %v2039_v42, %v2038_v21 }
 0x85b   :  { %2863 = vmatprep.mubr.f32.mxu0 %v4481_v55  ;;  %v3437_v0 = vpack.c.bf16 %v2021_v46, %v2020_v36  ;;  %v2016_v36 = vld [vmem:[%s4700_s5 + $0x70] sm:$0xff]  ;;  %v2017_v46 = vld [vmem:[%s4700_s5 + $0x78] sm:$0xff] }
 0x85c   :  { %2864 = vmatmul.mubr.f32.vlgmr.msra.gmra.mrb[16].mxu0 %v4486_v1  ;;  %v3491_v56 = vpack.c.bf16 %v2017_v46, %v2016_v36 }
 0x85d   :  { %2866 = vmatprep.mubr.f32.mxu0 %v4491_v26  ;;  %3438 = vmatpush1.bf16.msra.mxu1 %v3437_v0  ;;  %v3467_v0 = vpack.c.bf16 %v2041_v27, %v2040_v57 }
 0x85e   :  { %3439 = vmatprep.subr.bf16.mxu1 %v3672_v4  ;;  %3471 = vmatpush3.bf16.msra.mxu0 %v3470_v34 }
 0x85f   :  { %3472 = vmatprep.subr.bf16.mxu0 %v3672_v4 }
 0x860   :  { %2867 = vmatmul.mubr.f32.gmra.mrb[18].mxu0 %v4496_v60 }
 0x861   :  { %2869 = vmatprep.mubr.f32.mxu0 %v4501_v12  ;;  %3441 = vmatpush1.bf16.msra.mxu1 %v3440_v14  ;;  %v1908_v14 = vpop.permute.xlu1 %1907 }
 0x862   :  { %3442 = vmatprep.subr.bf16.mxu1 %v3672_v4  ;;  %3474 = vmatpush3.bf16.msra.mxu0 %v3473_v61  ;;  %vm1926_vm15 = vcmp.eq.s32.totalorder %v1908_v14, 1 }
 0x863   :  { %3475 = vmatprep.subr.bf16.mxu0 %v3672_v4 }
 0x864   :  { %2870 = vmatmul.mubr.f32.gmra.mrb[20].mxu0 %v4506_v58 }
 0x865   :  { %2872 = vmatprep.mubr.f32.mxu0 %v4511_v63  ;;  %3444 = vmatpush1.bf16.msra.mxu1 %v3443_v18  ;;  %v1911_v32 = vpop.permute.xlu1 %1910  ;;  %v1905_v18 = vpop.permute.xlu0 %1904 }
 0x866   :  { %3445 = vmatprep.subr.bf16.mxu1 %v3672_v4  ;;  %3477 = vmatpush3.bf16.msra.mxu0 %v3476_v19  ;;  %vm1925_vm11 = vcmp.eq.s32.totalorder %v1905_v18, 1  ;;  %vm1927_vm0 = vcmp.eq.s32.totalorder %v1911_v32, 1 }
 0x867   :  { %3478 = vmatprep.subr.bf16.mxu0 %v3672_v4 }
 0x868   :  { %2873 = vmatmul.mubr.f32.gmra.mrb[22].mxu0 %v4515_v5 }
 0x869   :  { %2907 = vmatprep.mubr.msk.f32.mxu0 %vm3673_vm1, %v3671_v7  ;;  %3447 = vmatpush1.bf16.msra.mxu1 %v3446_v6  ;;  %v1770_v6 = vstv %s1769_s22  ;;  %v1917_v33 = vpop.permute.xlu1 %1916  ;;  %v1914_v35 = vpop.permute.xlu0 %1913 }
 0x86a   :  { %3448 = vmatprep.subr.bf16.mxu1 %v3672_v4  ;;  %3480 = vmatpush3.bf16.msra.mxu0 %v3479_v47  ;;  %vm1929_vm13 = vcmp.eq.s32.totalorder %v1917_v33, 1  ;;  %vm1928_vm14 = vcmp.eq.s32.totalorder %v1914_v35, 1 }
 0x86b   :  { %3481 = vmatprep.subr.bf16.mxu0 %v3672_v4 }
 0x86d   :  { %3450 = vmatpush1.bf16.msra.mxu1 %v3449_v44  ;;  %v1923_v3 = vpop.permute.xlu1 %1922  ;;  %v1920_v19 = vpop.permute.xlu0 %1919 }
 0x86e   :  { %3451 = vmatprep.subr.bf16.mxu1 %v3672_v4  ;;  %3483 = vmatpush3.bf16.msra.mxu0 %v3482_v17  ;;  %vm1930_vm2 = vcmp.eq.s32.totalorder %v1920_v19, 1 }
 0x86f   :  { %3484 = vmatprep.subr.bf16.mxu0 %v3672_v4 }
 0x871   :  { %3453 = vmatpush1.bf16.msra.mxu1 %v3452_v9 }
 0x872   :  { %3454 = vmatprep.subr.bf16.mxu1 %v3672_v4  ;;  %3486 = vmatpush3.bf16.msra.mxu0 %v3485_v45 }
 0x873   :  { %3487 = vmatprep.subr.bf16.mxu0 %v3672_v4 }
 0x875   :  { %3456 = vmatpush1.bf16.msra.mxu1 %v3455_v31 }
 0x876   :  { %3457 = vmatprep.subr.bf16.mxu1 %v3672_v4  ;;  %3489 = vmatpush3.bf16.msra.mxu0 %v3488_v13 }
 0x877   :  { %3490 = vmatprep.subr.bf16.mxu0 %v3672_v4 }
 0x879   :  { %3459 = vmatpush1.bf16.msra.mxu1 %v3458_v59 }
 0x87a   :  { %3460 = vmatprep.subr.bf16.mxu1 %v3672_v4  ;;  %3492 = vmatpush3.bf16.msra.mxu0 %v3491_v56 }
 0x87d   :  { %3462 = vmatpush1.bf16.msra.mxu1 %v3461_v39 }
 0x87e   :  { %3463 = vmatprep.subr.bf16.mxu1 %v3672_v4 }
 0x881   :  { %3465 = vmatpush1.bf16.msra.mxu1 %v3464_v54 }
 0x882   :  { %3466 = vmatprep.subr.bf16.mxu1 %v3672_v4 }
 0x885   :  { %3468 = vmatpush1.bf16.msra.mxu1 %v3467_v0 }
 0x886   :  { %3493 = vmatprep.subr.bf16.mxu1 %v3672_v4 }
 0x888   :  { %2113 = vmatmul.mubr.f32.vlgmr.msra.gmra.mrb[24].mxu1 %v2043_v11 }
 0x889   :  { %2918 = vmatprep.mubr.msk.f32.mxu1 %vm3673_vm1, %v3671_v7  ;;  %vm1931_vm1 = vcmp.eq.s32.totalorder %v1923_v3, 1 }
 0x92f   :  { %v2865_v22 = vpop.f32.mrb[16].mxu0 }
 0x930   :  { %v1837_v24 = vpop.f32.mrb[17].mxu0  ;;  %v1843_v41 = vadd.f32 %v2865_v22, %v1770_v6 }
 0x931   :  { %v1838_v44 = vadd.f32 %v1837_v24, %v1770_v6 }
 0x932   :  { %v1933_v62 = vsel %vm1925_vm11, -1e+30, %v1843_v41 }
 0x933   :  { %v2868_v28 = vpop.f32.mrb[18].mxu0  ;;  %v1932_v15 = vsel %vm1924_vm12, -1e+30, %v1838_v44 }
 0x934   :  { %v1847_v34 = vpop.f32.mrb[19].mxu0  ;;  %v1853_v9 = vadd.f32 %v2868_v28, %v1770_v6 }
 0x935   :  { %v1848_v20 = vadd.f32 %v1847_v34, %v1770_v6 }
 0x936   :  { %v1935_v50 = vsel %vm1927_vm0, -1e+30, %v1853_v9 }
 0x937   :  { %v2871_v52 = vpop.f32.mrb[20].mxu0  ;;  %v1934_v17 = vsel %vm1926_vm15, -1e+30, %v1848_v20 }
 0x938   :  { %v1863_v53 = vadd.f32 %v2871_v52, %v1770_v6  ;;  %v1857_v61 = vpop.f32.mrb[21].mxu0 }
 0x939   :  { %v1858_v7 = vadd.f32 %v1857_v61, %v1770_v6 }
 0x93a   :  { %v1937_v10 = vsel %vm1929_vm13, -1e+30, %v1863_v53 }
 0x93b   :  { %v1941_v25 = vmax.f32 %v1933_v62, %v1937_v10  ;;  %v1936_v29 = vsel %vm1928_vm14, -1e+30, %v1858_v7  ;;  %v2874_v31 = vpop.f32.mrb[22].mxu0 }
 0x93c   :  { %v1940_v37 = vmax.f32 %v1932_v15, %v1936_v29  ;;  %v1873_v40 = vadd.f32 %v2874_v31, %v1770_v6  ;;  %v1867_v43 = vpop.f32.mrb[23].mxu0 }
 0x93d   :  { %v1868_v47 = vadd.f32 %v1867_v43, %v1770_v6 }
 0x93e   :  { %v1944_v51 = vmax.f32 %v1940_v37, %v1941_v25  ;;  %v1939_v59 = vsel %vm1931_vm1, -1e+30, %v1873_v40 }
 0x93f   :  { %v1943_v30 = vmax.f32 %v1935_v50, %v1939_v59  ;;  %v1938_v2 = vsel %vm1930_vm2, -1e+30, %v1868_v47 }
 0x940   :  { %v1942_v8 = vmax.f32 %v1934_v17, %v1938_v2 }
 0x942   :  { %v1945_v23 = vmax.f32 %v1942_v8, %v1943_v30 }
 0x944   :  { %v1946_v38 = vmax.f32 %v1944_v51, %v1945_v23 }
 0x946   :  { %v1947_v39 = vsub.f32 %v1932_v15, %v1946_v38  ;;  %v1948_v45 = vsub.f32 %v1933_v62, %v1946_v38  ;;  %v1949_v21 = vsub.f32 %v1934_v17, %v1946_v38  ;;  %v1950_v42 = vsub.f32 %v1935_v50, %v1946_v38 }
 0x947   :  { %v1951_v48 = vsub.f32 %v1936_v29, %v1946_v38  ;;  %v1952_v49 = vsub.f32 %v1937_v10, %v1946_v38  ;;  %v1953_v54 = vsub.f32 %v1938_v2, %v1946_v38  ;;  %v1954_v13 = vsub.f32 %v1939_v59, %v1946_v38 }
 0x948   :  { %v1955_v57 = vmul.f32 1.442695, %v1947_v39  ;;  %v1957_v27 = vmul.f32 1.442695, %v1948_v45  ;;  %v1959_v36 = vmul.f32 1.442695, %v1949_v21 }
 0x949   :  { %v1961_v46 = vmul.f32 1.442695, %v1950_v42  ;;  %v1963_v0 = vmul.f32 1.442695, %v1951_v48  ;;  %v1965_v56 = vmul.f32 1.442695, %v1952_v49 }
 0x94a   :  { %3634 = vpow2.f32 %v1955_v57  ;;  %v1967_v11 = vmul.f32 1.442695, %v1953_v54  ;;  %v1969_v14 = vmul.f32 1.442695, %v1954_v13  ;;  %v2321_v39 = vld [vmem:[%s4700_s5 + $0x140] ss:$0 sm:$0xff]  ;;  %v2199_v54 = vstv %s2322_s8 }
 0x94b   :  { %3636 = vpow2.f32 %v1957_v27 }
 0x94c   :  { %3638 = vpow2.f32 %v1959_v36 }
 0x94d   :  { %3640 = vpow2.f32 %v1961_v46 }
 0x94e   :  { %3642 = vpow2.f32 %v1963_v0 }
 0x94f   :  { %3644 = vpow2.f32 %v1965_v56 }
 0x950   :  { %3646 = vpow2.f32 %v1967_v11 }
 0x951   :  { %3648 = vpow2.f32 %v1969_v14 }
 0x954   :  { %v3635_v16 = vpop.eup %3634 }
 0x955   :  { %v3637_v32 = vpop.eup %3636 }
 0x956   :  { %v1971_v18 = vadd.f32 %v3637_v32, %v3635_v16  ;;  %v3639_v22 = vpop.eup %3638 }
 0x957   :  { %v3641_v6 = vpop.eup %3640 }
 0x958   :  { %v1972_v24 = vadd.f32 %v3639_v22, %v1971_v18  ;;  %v3643_v33 = vpop.eup %3642 }
 0x959   :  { %v3645_v35 = vpop.eup %3644 }
 0x95a   :  { %v1973_v28 = vadd.f32 %v3641_v6, %v1972_v24  ;;  %v3647_v44 = vpop.eup %3646 }
 0x95b   :  { %v3649_v53 = vpop.eup %3648 }
 0x95c   :  { %v1974_v34 = vadd.f32 %v3643_v33, %v1973_v28 }
 0x95e   :  { %v1975_v41 = vadd.f32 %v3645_v35, %v1974_v34 }
 0x960   :  { %v1976_v52 = vadd.f32 %v3647_v44, %v1975_v41 }
 0x962   :  { %v1977_v61 = vadd.f32 %v3649_v53, %v1976_v52 }
 0x964   :  { %3650 = vrcp.f32 %v1977_v61 }
 0x96e   :  { %v3651_v7 = vpop.eup %3650 }
 0x96f   :  { %v1985_v62 = vmul.f32 %v3651_v7, %v3647_v44  ;;  %v1979_v3 = vmul.f32 %v3651_v7, %v3635_v16  ;;  %v1980_v9 = vmul.f32 %v3651_v7, %v3637_v32  ;;  %v1981_v10 = vmul.f32 %v3651_v7, %v3639_v22 }
 0x970   :  { %v1982_v15 = vmul.f32 %v3651_v7, %v3641_v6  ;;  %v1983_v19 = vmul.f32 %v3651_v7, %v3643_v33  ;;  %v1984_v20 = vmul.f32 %v3651_v7, %v3645_v35  ;;  %v1986_v25 = vmul.f32 %v3651_v7, %v3649_v53 }
 0x971   :  { %v1987_v29 = vmul.f32 %v1979_v3, %v4481_v55  ;;  %v1988_v31 = vmul.f32 %v1980_v9, %v4486_v1  ;;  %v1989_v37 = vmul.f32 %v1981_v10, %v4491_v26  ;;  %v1993_v30 = vmul.f32 %v1985_v62, %v4511_v63  ;;  %v2194_v1 = vld [vmem:[%s4699_s4 + $0x80] sm:$0xff]  ;;  %v2195_v26 = vld [vmem:[%s4699_s4 + $0x88] sm:$0xff]  ;;  %v2197_v63 = vld [vmem:[%s4699_s4 + $0x98] sm:$0xff] }
 0x972   :  { %v1990_v43 = vmul.f32 %v1982_v15, %v4496_v60  ;;  %v1991_v50 = vmul.f32 %v1983_v19, %v4501_v12  ;;  %v1992_v59 = vmul.f32 %v1984_v20, %v4506_v58  ;;  %v1994_v8 = vmul.f32 %v1986_v25, %v4515_v5  ;;  %v2114_v12 = vpop.f32.mrb[24].mxu1  ;;  %v2196_v58 = vld [vmem:[%s4699_s4 + $0x90] sm:$0xff] }
 0x973   :  { %v1995_v40 = vadd.f32 %v1988_v31, %v1987_v29  ;;  %v3494_v60 = vpack.c.bf16 %v2195_v26, %v2194_v1  ;;  %v2116_v5 = vpop.f32.mrb[25].mxu1  ;;  %v3497_v38 = vpack.c.bf16 %v2197_v63, %v2196_v58 }
 0x975   :  { %v1996_v47 = vadd.f32 %v1995_v40, %v1989_v37  ;;  %3495 = vmatpush3.bf16.msra.mxu1 %v3494_v60 }
 0x976   :  { %3496 = vmatprep.subr.bf16.mxu1 %v3672_v4 }
 0x977   :  { %v1997_v51 = vadd.f32 %v1996_v47, %v1990_v43 }
 0x979   :  { %v1998_v17 = vadd.f32 %v1997_v51, %v1991_v50  ;;  %3498 = vmatpush3.bf16.msra.mxu1 %v3497_v38 }
 0x97b   :  { %v1999_v2 = vadd.f32 %v1998_v17, %v1992_v59 }
 0x97d   :  { %v2000_v55 = vadd.f32 %v1999_v2, %v1993_v30 }
 0x97f   :  { %v2001_v23 = vadd.f32 %v2000_v55, %v1994_v8 }
 0x981   :  { %2908 = vmatmul.mubr.f32.vlgmr.msra.gmra.mrb[24].mxu0 %v2001_v23 }
 0xa54   :  { %v2184_v45 = vpop.f32.mrb[24].mxu0 }
 0xa55   :  { %v2185_v21 = vadd.f32 %v2184_v45, %v2114_v12  ;;  %v2909_v42 = vpop.f32.mrb[25].mxu0 }
 0xa57   :  { %v2192_v48 = vadd.f32 %v2321_v39, %v2185_v21 }
 0xa59   :  { %v2193_v49 = vmax.f32 %v2192_v48, 0.0 }
 0xa5b   :  { %2919 = vmatmul.mubr.msk.f32.vlgmr.msra.gmra.mrb[26].mxu1 %vm2200_vm3, %v2193_v49 }
 0xb2e   :  { %v2270_v13 = vpop.f32.mrb[26].mxu1 }
 0xb2f   :  { %v2271_v57 = vadd.f32 %v2270_v13, %v2199_v54  ;;  %v2920_v27 = vpop.f32.mrb[27].mxu1 }
 0xb31   :  { %v2324_v36 = vmul.f32 -1.442695, %v2271_v57 }
 0xb33   :  { %3652 = vpow2.f32 %v2324_v36 }
 0xb3d   :  { %v3653_v4 = vpop.eup %3652 }
 0xb3e   :  { %v2277_v46 = vadd.f32 1.0, %v3653_v4 }
 0xb40   :  { %3654 = vrcp.f32 %v2277_v46 }
 0xb4a   :  { %v3655_v0 = vpop.eup %3654 }
 0xb4b   :  { %2280 = vst [vmem:[%s4702_s7] sm:$0xff] %v3655_v0 }
 0xb4c   :  { %2285 = vsyncpa [#allocation5], 1 }

</bundles_post_ra>
